<compile_context>
chip_gen: v7x
topology: tpu7x:2x2x1
jax: 0.10.0
libtpu: 0.0.40
codegen_flags: <defaults>
</compile_context>

<pallas_src>
import functools

import numpy as np
import jax
import jax.numpy as jnp
from jax import lax
from jax.experimental import pallas as pl
from jax.experimental.pallas import tpu as pltpu

INF = 1.0e12


def _rotate_pairs(w):
    """RoPE pair swap applied to the last axis: out[2i] = -w[2i+1], out[2i+1] = w[2i]."""
    even = w[..., 0::2]
    odd = w[..., 1::2]
    return jnp.stack([-odd, even], axis=-1).reshape(w.shape)


def _pointer_kernel(x_ref, wq_ref, wq2_ref, wk_ref, wk2_ref,
                    bq_ref, bq2_ref, bk_ref, bk2_ref,
                    cos_ref, sin_ref, mq_ref, mn_ref,
                    o_ref, mult_sc, add_sc, *,
                    head_size, tq, rope, tril_mask, inf, mxu_dtype):
    D = head_size
    scale = 1.0 / (float(D) ** 0.5)
    f32 = jnp.float32

    qi = pl.program_id(1)
    h = pl.program_id(2)
    q_start = pl.multiple_of(qi * tq, tq)

    # ---- fused mask / tril / scale epilogue, computed once per (batch, q-tile) ----
    # out = L*mult + add   with   mult = mq*mn*scale
    #                             add  = (mq*mn - 1 - tril) * inf * scale
    # which is algebraically identical to seq_masking(axis=2) -> seq_masking(axis=3)
    # -> (- tril*inf) -> /sqrt(D) of the reference.
    @pl.when(h == 0)
    def _():
        p = mq_ref[0] * mn_ref[0]                        # [TQ, S_pad]
        mult_sc[...] = p * scale
        if tril_mask:
            row = lax.broadcasted_iota(jnp.int32, p.shape, 0) + q_start
            col = lax.broadcasted_iota(jnp.int32, p.shape, 1)
            low = (row > col).astype(f32)                # torch.tril(ones, -1)
            add_sc[...] = (p - (1.0 + low)) * (inf * scale)
        else:
            add_sc[...] = (p - 1.0) * (inf * scale)

    # ---- projections (bf16 MXU, f32 accumulate) ----
    x_all = x_ref[0]                                     # [S_pad, H]  keys need all rows
    x_q = x_ref[0, pl.ds(q_start, tq), :]                # [TQ, H]     queries need the tile

    k = jnp.dot(x_all, wk_ref[0], preferred_element_type=f32) + bk_ref[0]   # [S_pad, D]
    q = jnp.dot(x_q, wq_ref[0], preferred_element_type=f32) + bq_ref[0]     # [TQ, D]

    if rope:
        # rotate-half folded into the second (pre-rotated) weights, no R matmul / shuffle
        k2 = jnp.dot(x_all, wk2_ref[0], preferred_element_type=f32) + bk2_ref[0]
        q2 = jnp.dot(x_q, wq2_ref[0], preferred_element_type=f32) + bq2_ref[0]
        cos_q = cos_ref[pl.ds(q_start, tq), :]
        sin_q = sin_ref[pl.ds(q_start, tq), :]
        k = k * cos_ref[...] + k2 * sin_ref[...]
        q = q * cos_q + q2 * sin_q

    # ---- QK^T on the MXU ----
    logits = lax.dot_general(q.astype(mxu_dtype), k.astype(mxu_dtype),
                             (((1,), (1,)), ((), ())),
                             preferred_element_type=f32)                    # [TQ, S_pad]

    o_ref[0, 0] = (logits * mult_sc[...] + add_sc[...]).astype(o_ref.dtype)


def pointer_layer(context_output, mask, W, bias, *,
                  heads, head_size, rope=True, tril_mask=True, inf=INF,
                  q_tile=512, out_dtype=None, matmul_dtype=jnp.bfloat16,
                  vmem_limit_bytes=None):
    """context_output: [B, S, H]; W: [H, heads*head_size*2] (transposed torch Linear.weight);
    bias: [heads*head_size*2]; returns [B, heads, S, S] logits (bhmn)."""
    B, S, H = context_output.shape
    D = head_size
    if out_dtype is None:
        out_dtype = context_output.dtype

    # --- pad S to a multiple of 128 so the output last dim is lane-dense ---
    S_pad = ((S + 127) // 128) * 128
    # query-tile size: multiple of 128 dividing S_pad, capped at q_tile (VMEM budget knob;
    # TQ<=512 keeps per-step blocks well inside v7x's 32 MiB default scoped VMEM).
    if S_pad <= q_tile:
        TQ = S_pad
    else:
        TQ = (q_tile // 128) * 128
        while S_pad % TQ:
            TQ -= 128
    QT = S_pad // TQ

    # --- per-head weight/bias slabs, plus RoPE-rotated copies (wrapper-side glue) ---
    Wr = W.astype(jnp.float32).reshape(H, heads, 2, D)
    Wq = jnp.transpose(Wr[:, :, 0, :], (1, 0, 2))        # [heads, H, D]
    Wk = jnp.transpose(Wr[:, :, 1, :], (1, 0, 2))
    Wq2 = _rotate_pairs(Wq)
    Wk2 = _rotate_pairs(Wk)

    br = bias.astype(jnp.float32).reshape(heads, 2, D)
    bq = br[:, 0:1, :]                                   # [heads, 1, D]
    bk = br[:, 1:2, :]
    bq2 = _rotate_pairs(bq)
    bk2 = _rotate_pairs(bk)

    # --- RoPE sin/cos tables (repeat-interleaved over pairs), length S_pad ---
    idx = jnp.arange(D // 2, dtype=jnp.float32)
    inv_freq = jnp.power(10000.0, -2.0 * idx / D)
    theta = jnp.arange(S_pad, dtype=jnp.float32)[:, None] * inv_freq[None, :]   # [S_pad, D/2]
    cos_t = jnp.repeat(jnp.cos(theta), 2, axis=-1)       # [S_pad, D]
    sin_t = jnp.repeat(jnp.sin(theta), 2, axis=-1)

    # --- masks (padded positions are masked out; cropped anyway) ---
    if mask is None:
        m = jnp.ones((B, S), jnp.float32)
    else:
        m = mask.astype(jnp.float32)
    m = jnp.pad(m, ((0, 0), (0, S_pad - S)))
    mq = m[:, :, None]                                   # [B, S_pad, 1]
    mn = m[:, None, :]                                   # [B, 1, S_pad]

    x_p = jnp.pad(context_output, ((0, 0), (0, S_pad - S), (0, 0))).astype(matmul_dtype)
    Wq_c, Wq2_c = Wq.astype(matmul_dtype), Wq2.astype(matmul_dtype)
    Wk_c, Wk2_c = Wk.astype(matmul_dtype), Wk2.astype(matmul_dtype)

    kernel = functools.partial(
        _pointer_kernel, head_size=D, tq=TQ, rope=rope,
        tril_mask=tril_mask, inf=inf, mxu_dtype=matmul_dtype)

    cp_kwargs = dict(dimension_semantics=("parallel", "parallel", "arbitrary"))
    if vmem_limit_bytes is not None:
        cp_kwargs["vmem_limit_bytes"] = vmem_limit_bytes

    w_spec = pl.BlockSpec((1, H, D), lambda b, q, h: (h, 0, 0))
    b_spec = pl.BlockSpec((1, 1, D), lambda b, q, h: (h, 0, 0))

    out = pl.pallas_call(
        kernel,
        out_shape=jax.ShapeDtypeStruct((B, heads, S_pad, S_pad), out_dtype),
        grid_spec=pltpu.PrefetchScalarGridSpec(
            num_scalar_prefetch=0,
            grid=(B, QT, heads),
            in_specs=[
                pl.BlockSpec((1, S_pad, H), lambda b, q, h: (b, 0, 0)),   # x (resident over q,h)
                w_spec, w_spec, w_spec, w_spec,                            # Wq, Wq2, Wk, Wk2
                b_spec, b_spec, b_spec, b_spec,                            # bq, bq2, bk, bk2
                pl.BlockSpec((S_pad, D), lambda b, q, h: (0, 0)),          # cos
                pl.BlockSpec((S_pad, D), lambda b, q, h: (0, 0)),          # sin
                pl.BlockSpec((1, TQ, 1), lambda b, q, h: (b, q, 0)),       # query-axis mask tile
                pl.BlockSpec((1, 1, S_pad), lambda b, q, h: (b, 0, 0)),    # key-axis mask
            ],
            out_specs=pl.BlockSpec((1, 1, TQ, S_pad), lambda b, q, h: (b, h, q, 0)),
            scratch_shapes=[pltpu.VMEM((TQ, S_pad), jnp.float32),          # fused mask: mult
                            pltpu.VMEM((TQ, S_pad), jnp.float32)],         # fused mask: add
        ),
        compiler_params=pltpu.CompilerParams(**cp_kwargs),
    )(x_p, Wq_c, Wq2_c, Wk_c, Wk2_c, bq, bq2, bk, bk2, cos_t, sin_t, mq, mn)

    return out[:, :, :S, :S]


def _reference(x, mask, W, bias, *, heads, head_size,
               rope=True, tril_mask=True, inf=INF):
    """Pure-JAX f32 mirror of the torch forward (for verification)."""
    B, S, H = x.shape
    D = head_size
    out = x @ W + bias                                   # [B, S, heads*2D]
    out = out.reshape(B, S, heads, 2 * D)
    qw, kw = out[..., :D], out[..., D:]
    if rope:
        idx = jnp.arange(D // 2, dtype=jnp.float32)
        inv_freq = jnp.power(10000.0, -2.0 * idx / D)
        theta = jnp.arange(S, dtype=jnp.float32)[:, None] * inv_freq[None, :]
        cos = jnp.repeat(jnp.cos(theta), 2, -1)[None, :, None, :]
        sin = jnp.repeat(jnp.sin(theta), 2, -1)[None, :, None, :]

        def rot(v):
            v2 = jnp.stack([-v[..., 1::2], v[..., ::2]], -1).reshape(v.shape)
            return v * cos + v2 * sin

        qw, kw = rot(qw), rot(kw)
    logits = jnp.einsum('bmhd,bnhd->bhmn', qw, kw,
                        preferred_element_type=jnp.float32)
    if mask is not None:
        m = mask.astype(jnp.float32)
        mqr = m[:, None, :, None]
        mnr = m[:, None, None, :]
        logits = logits * mqr + (1.0 - mqr) * (-inf)
        logits = logits * mnr + (1.0 - mnr) * (-inf)
    if tril_mask:
        t = jnp.tril(jnp.ones((S, S), jnp.float32), -1)
        logits = logits - t * inf
    return logits / (D ** 0.5)


if __name__ == "__main__":
    heads, D, H = 2, 16, 32

    key = jax.random.PRNGKey(0)
    k1, k2, k3 = jax.random.split(key, 3)
    W = jax.random.normal(k2, (H, heads * D * 2), jnp.float32) * 0.05
    bias = jax.random.normal(k3, (heads * D * 2,), jnp.float32) * 0.01

    # --- case 1: B=2, S=16 (padded to 128, single q tile) ---
    B, S = 2, 16
    x = jax.random.normal(k1, (B, S, H), jnp.float32)
    lengths = jnp.array([S, S - 5])
    mask = (jnp.arange(S)[None, :] < lengths[:, None]).astype(jnp.float32)

    out = pointer_layer(x, mask, W, bias, heads=heads, head_size=D,
                        rope=True, tril_mask=True)
    out = jax.block_until_ready(out)
    ref = _reference(x, mask, W, bias, heads=heads, head_size=D,
                     rope=True, tril_mask=True)
    np.testing.assert_allclose(np.asarray(out), np.asarray(ref),
                               rtol=5e-2, atol=2e-2)

    # --- case 2: B=1, S=160 (padded to 256, two q tiles of 128) ---
    B2, S2 = 1, 160
    k4, _ = jax.random.split(k3)
    x2 = jax.random.normal(k4, (B2, S2, H), jnp.float32)
    mask2 = (jnp.arange(S2)[None, :] < (S2 - 7)).astype(jnp.float32)

    out2 = pointer_layer(x2, mask2, W, bias, heads=heads, head_size=D,
                         rope=True, tril_mask=True, q_tile=128)
    out2 = jax.block_until_ready(out2)
    ref2 = _reference(x2, mask2, W, bias, heads=heads, head_size=D,
                      rope=True, tril_mask=True)
    np.testing.assert_allclose(np.asarray(out2), np.asarray(ref2),
                               rtol=5e-2, atol=2e-2)

    print("KERNEL_OK")
</pallas_src>

<mosaic_0001>
module attributes {stable_mosaic.version = 11 : i64} {
  func.func @_pointer_kernel(%arg0: i32, %arg1: i32, %arg2: i32, %arg3: memref<1x128x32xbf16, #tpu.memory_space<vmem>>, %arg4: memref<1x32x16xbf16, #tpu.memory_space<vmem>>, %arg5: memref<1x32x16xbf16, #tpu.memory_space<vmem>>, %arg6: memref<1x32x16xbf16, #tpu.memory_space<vmem>>, %arg7: memref<1x32x16xbf16, #tpu.memory_space<vmem>>, %arg8: memref<1x1x16xf32, #tpu.memory_space<vmem>>, %arg9: memref<1x1x16xf32, #tpu.memory_space<vmem>>, %arg10: memref<1x1x16xf32, #tpu.memory_space<vmem>>, %arg11: memref<1x1x16xf32, #tpu.memory_space<vmem>>, %arg12: memref<128x16xf32, #tpu.memory_space<vmem>>, %arg13: memref<128x16xf32, #tpu.memory_space<vmem>>, %arg14: memref<1x128x1xf32, #tpu.memory_space<vmem>>, %arg15: memref<1x1x128xf32, #tpu.memory_space<vmem>>, %arg16: memref<1x1x128x128xf32, #tpu.memory_space<vmem>>, %arg17: memref<128x128xf32, #tpu.memory_space<vmem>>, %arg18: memref<128x128xf32, #tpu.memory_space<vmem>>) attributes {dimension_semantics = [#tpu.dimension_semantics<parallel>, #tpu.dimension_semantics<parallel>, #tpu.dimension_semantics<arbitrary>], iteration_bounds = array<i64: 2, 1, 2>, scalar_prefetch = 0 : i64, scratch_operands = 2 : i64, tpu.core_type = #tpu.core_type<tc>, window_params = [{transform_indices = @transform_0, window_bounds = array<i64: 1, 128, 32>}, {transform_indices = @transform_1, window_bounds = array<i64: 1, 32, 16>}, {transform_indices = @transform_2, window_bounds = array<i64: 1, 32, 16>}, {transform_indices = @transform_3, window_bounds = array<i64: 1, 32, 16>}, {transform_indices = @transform_4, window_bounds = array<i64: 1, 32, 16>}, {transform_indices = @transform_5, window_bounds = array<i64: 1, 1, 16>}, {transform_indices = @transform_6, window_bounds = array<i64: 1, 1, 16>}, {transform_indices = @transform_7, window_bounds = array<i64: 1, 1, 16>}, {transform_indices = @transform_8, window_bounds = array<i64: 1, 1, 16>}, {pipeline_mode = #tpu.pipeline_mode<synchronous>, transform_indices = @transform_9, window_bounds = array<i64: 128, 16>}, {pipeline_mode = #tpu.pipeline_mode<synchronous>, transform_indices = @transform_10, window_bounds = array<i64: 128, 16>}, {transform_indices = @transform_11, window_bounds = array<i64: 1, 128, 1>}, {transform_indices = @transform_12, window_bounds = array<i64: 1, 1, 128>}, {transform_indices = @transform_13, window_bounds = array<i64: 1, 1, 128, 128>}]} {
    %c128_i32 = arith.constant 128 : i32
    %0 = arith.muli %arg1, %c128_i32 : i32
    %1 = tpu.assume_multiple %0, 128 : i32
    %c0_i32 = arith.constant 0 : i32
    %2 = arith.cmpi eq, %arg2, %c0_i32 : i32
    %3 = arith.extui %2 : i1 to i32
    %c0_i32_0 = arith.constant 0 : i32
    %4 = arith.cmpi ne, %3, %c0_i32_0 : i32
    scf.if %4 {
      %c0_47 = arith.constant 0 : index
      %c0_48 = arith.constant 0 : index
      %c0_49 = arith.constant 0 : index
      %60 = vector.load %arg14[%c0_47, %c0_48, %c0_49] : memref<1x128x1xf32, #tpu.memory_space<vmem>>, vector<1x128x1xf32>
      %61 = vector.shape_cast %60 : vector<1x128x1xf32> to vector<128x1xf32>
      %c0_50 = arith.constant 0 : index
      %c0_51 = arith.constant 0 : index
      %c0_52 = arith.constant 0 : index
      %62 = vector.load %arg15[%c0_50, %c0_51, %c0_52] : memref<1x1x128xf32, #tpu.memory_space<vmem>>, vector<1x1x128xf32>
      %63 = vector.shape_cast %62 : vector<1x1x128xf32> to vector<1x128xf32>
      %64 = vector.broadcast %61 : vector<128x1xf32> to vector<128x128xf32>
      %65 = vector.broadcast %63 : vector<1x128xf32> to vector<128x128xf32>
      %66 = arith.mulf %64, %65 : vector<128x128xf32>
      %cst_53 = arith.constant 2.500000e-01 : f32
      %67 = vector.broadcast %cst_53 : f32 to vector<128x128xf32>
      %68 = arith.mulf %66, %67 : vector<128x128xf32>
      %c0_54 = arith.constant 0 : index
      %c0_55 = arith.constant 0 : index
      %69 = vector.load %arg17[%c0_54, %c0_55] : memref<128x128xf32, #tpu.memory_space<vmem>>, vector<128x128xf32>
      tpu.vector_store %arg17[%c0_54, %c0_55], %68 {strides = array<i32>} : memref<128x128xf32, #tpu.memory_space<vmem>>, vector<128x128xf32>,
      %70 = tpu.iota {dimensions = array<i32: 0>} : vector<128x128xi32>
      %71 = vector.broadcast %1 : i32 to vector<128x128xi32>
      %72 = arith.addi %70, %71 : vector<128x128xi32>
      %73 = tpu.iota {dimensions = array<i32: 1>} : vector<128x128xi32>
      %74 = arith.cmpi sgt, %72, %73 : vector<128x128xi32>
      %75 = arith.extui %74 : vector<128x128xi1> to vector<128x128xi32>
      %76 = arith.sitofp %75 : vector<128x128xi32> to vector<128x128xf32>
      %cst_56 = arith.constant 1.000000e+00 : f32
      %77 = vector.broadcast %cst_56 : f32 to vector<128x128xf32>
      %78 = arith.addf %77, %76 : vector<128x128xf32>
      %79 = arith.subf %66, %78 : vector<128x128xf32>
      %cst_57 = arith.constant 2.500000e+11 : f32
      %80 = vector.broadcast %cst_57 : f32 to vector<128x128xf32>
      %81 = arith.mulf %79, %80 : vector<128x128xf32>
      %c0_58 = arith.constant 0 : index
      %c0_59 = arith.constant 0 : index
      %82 = vector.load %arg18[%c0_58, %c0_59] : memref<128x128xf32, #tpu.memory_space<vmem>>, vector<128x128xf32>
      tpu.vector_store %arg18[%c0_58, %c0_59], %81 {strides = array<i32>} : memref<128x128xf32, #tpu.memory_space<vmem>>, vector<128x128xf32>,
    } else {
    }
    %c0 = arith.constant 0 : index
    %c0_1 = arith.constant 0 : index
    %c0_2 = arith.constant 0 : index
    %5 = vector.load %arg3[%c0, %c0_1, %c0_2] : memref<1x128x32xbf16, #tpu.memory_space<vmem>>, vector<1x128x32xbf16>
    %6 = vector.shape_cast %5 : vector<1x128x32xbf16> to vector<128x32xbf16>
    %c0_3 = arith.constant 0 : index
    %7 = arith.index_cast %1 : i32 to index
    %c0_4 = arith.constant 0 : index
    %8 = vector.load %arg3[%c0_3, %7, %c0_4] : memref<1x128x32xbf16, #tpu.memory_space<vmem>>, vector<1x128x32xbf16>
    %9 = vector.shape_cast %8 : vector<1x128x32xbf16> to vector<128x32xbf16>
    %c0_5 = arith.constant 0 : index
    %c0_6 = arith.constant 0 : index
    %c0_7 = arith.constant 0 : index
    %10 = vector.load %arg6[%c0_5, %c0_6, %c0_7] : memref<1x32x16xbf16, #tpu.memory_space<vmem>>, vector<1x32x16xbf16>
    %11 = vector.shape_cast %10 : vector<1x32x16xbf16> to vector<32x16xbf16>
    %cst = arith.constant dense<0.000000e+00> : vector<128x16xf32>
    %12 = tpu.matmul %6, %11, %cst {dimension_numbers = #tpu.dot_dimension_numbers<[1], [0], [0], [1], [0, 0, 1, 1], [], []>} : vector<128x32xbf16>, vector<32x16xbf16>, vector<128x16xf32> -> vector<128x16xf32>
    %c0_8 = arith.constant 0 : index
    %c0_9 = arith.constant 0 : index
    %c0_10 = arith.constant 0 : index
    %13 = vector.load %arg10[%c0_8, %c0_9, %c0_10] : memref<1x1x16xf32, #tpu.memory_space<vmem>>, vector<1x1x16xf32>
    %14 = vector.shape_cast %13 : vector<1x1x16xf32> to vector<1x16xf32>
    %15 = vector.broadcast %14 : vector<1x16xf32> to vector<128x16xf32>
    %16 = arith.addf %12, %15 : vector<128x16xf32>
    %c0_11 = arith.constant 0 : index
    %c0_12 = arith.constant 0 : index
    %c0_13 = arith.constant 0 : index
    %17 = vector.load %arg4[%c0_11, %c0_12, %c0_13] : memref<1x32x16xbf16, #tpu.memory_space<vmem>>, vector<1x32x16xbf16>
    %18 = vector.shape_cast %17 : vector<1x32x16xbf16> to vector<32x16xbf16>
    %cst_14 = arith.constant dense<0.000000e+00> : vector<128x16xf32>
    %19 = tpu.matmul %9, %18, %cst_14 {dimension_numbers = #tpu.dot_dimension_numbers<[1], [0], [0], [1], [0, 0, 1, 1], [], []>} : vector<128x32xbf16>, vector<32x16xbf16>, vector<128x16xf32> -> vector<128x16xf32>
    %c0_15 = arith.constant 0 : index
    %c0_16 = arith.constant 0 : index
    %c0_17 = arith.constant 0 : index
    %20 = vector.load %arg8[%c0_15, %c0_16, %c0_17] : memref<1x1x16xf32, #tpu.memory_space<vmem>>, vector<1x1x16xf32>
    %21 = vector.shape_cast %20 : vector<1x1x16xf32> to vector<1x16xf32>
    %22 = vector.broadcast %21 : vector<1x16xf32> to vector<128x16xf32>
    %23 = arith.addf %19, %22 : vector<128x16xf32>
    %c0_18 = arith.constant 0 : index
    %c0_19 = arith.constant 0 : index
    %c0_20 = arith.constant 0 : index
    %24 = vector.load %arg7[%c0_18, %c0_19, %c0_20] : memref<1x32x16xbf16, #tpu.memory_space<vmem>>, vector<1x32x16xbf16>
    %25 = vector.shape_cast %24 : vector<1x32x16xbf16> to vector<32x16xbf16>
    %cst_21 = arith.constant dense<0.000000e+00> : vector<128x16xf32>
    %26 = tpu.matmul %6, %25, %cst_21 {dimension_numbers = #tpu.dot_dimension_numbers<[1], [0], [0], [1], [0, 0, 1, 1], [], []>} : vector<128x32xbf16>, vector<32x16xbf16>, vector<128x16xf32> -> vector<128x16xf32>
    %c0_22 = arith.constant 0 : index
    %c0_23 = arith.constant 0 : index
    %c0_24 = arith.constant 0 : index
    %27 = vector.load %arg11[%c0_22, %c0_23, %c0_24] : memref<1x1x16xf32, #tpu.memory_space<vmem>>, vector<1x1x16xf32>
    %28 = vector.shape_cast %27 : vector<1x1x16xf32> to vector<1x16xf32>
    %29 = vector.broadcast %28 : vector<1x16xf32> to vector<128x16xf32>
    %30 = arith.addf %26, %29 : vector<128x16xf32>
    %c0_25 = arith.constant 0 : index
    %c0_26 = arith.constant 0 : index
    %c0_27 = arith.constant 0 : index
    %31 = vector.load %arg5[%c0_25, %c0_26, %c0_27] : memref<1x32x16xbf16, #tpu.memory_space<vmem>>, vector<1x32x16xbf16>
    %32 = vector.shape_cast %31 : vector<1x32x16xbf16> to vector<32x16xbf16>
    %cst_28 = arith.constant dense<0.000000e+00> : vector<128x16xf32>
    %33 = tpu.matmul %9, %32, %cst_28 {dimension_numbers = #tpu.dot_dimension_numbers<[1], [0], [0], [1], [0, 0, 1, 1], [], []>} : vector<128x32xbf16>, vector<32x16xbf16>, vector<128x16xf32> -> vector<128x16xf32>
    %c0_29 = arith.constant 0 : index
    %c0_30 = arith.constant 0 : index
    %c0_31 = arith.constant 0 : index
    %34 = vector.load %arg9[%c0_29, %c0_30, %c0_31] : memref<1x1x16xf32, #tpu.memory_space<vmem>>, vector<1x1x16xf32>
    %35 = vector.shape_cast %34 : vector<1x1x16xf32> to vector<1x16xf32>
    %36 = vector.broadcast %35 : vector<1x16xf32> to vector<128x16xf32>
    %37 = arith.addf %33, %36 : vector<128x16xf32>
    %38 = arith.index_cast %1 : i32 to index
    %c0_32 = arith.constant 0 : index
    %39 = vector.load %arg12[%38, %c0_32] : memref<128x16xf32, #tpu.memory_space<vmem>>, vector<128x16xf32>
    %40 = arith.index_cast %1 : i32 to index
    %c0_33 = arith.constant 0 : index
    %41 = vector.load %arg13[%40, %c0_33] : memref<128x16xf32, #tpu.memory_space<vmem>>, vector<128x16xf32>
    %c0_34 = arith.constant 0 : index
    %c0_35 = arith.constant 0 : index
    %42 = vector.load %arg12[%c0_34, %c0_35] : memref<128x16xf32, #tpu.memory_space<vmem>>, vector<128x16xf32>
    %43 = arith.mulf %16, %42 : vector<128x16xf32>
    %c0_36 = arith.constant 0 : index
    %c0_37 = arith.constant 0 : index
    %44 = vector.load %arg13[%c0_36, %c0_37] : memref<128x16xf32, #tpu.memory_space<vmem>>, vector<128x16xf32>
    %45 = arith.mulf %30, %44 : vector<128x16xf32>
    %46 = arith.addf %43, %45 : vector<128x16xf32>
    %47 = arith.mulf %23, %39 : vector<128x16xf32>
    %48 = arith.mulf %37, %41 : vector<128x16xf32>
    %49 = arith.addf %47, %48 : vector<128x16xf32>
    %50 = arith.truncf %49 : vector<128x16xf32> to vector<128x16xbf16>
    %51 = arith.truncf %46 : vector<128x16xf32> to vector<128x16xbf16>
    %cst_38 = arith.constant dense<0.000000e+00> : vector<128x128xf32>
    %52 = tpu.matmul %50, %51, %cst_38 {dimension_numbers = #tpu.dot_dimension_numbers<[1], [1], [0], [0], [0, 0, 1, 0], [], []>} : vector<128x16xbf16>, vector<128x16xbf16>, vector<128x128xf32> -> vector<128x128xf32>
    %c0_39 = arith.constant 0 : index
    %c0_40 = arith.constant 0 : index
    %53 = vector.load %arg17[%c0_39, %c0_40] : memref<128x128xf32, #tpu.memory_space<vmem>>, vector<128x128xf32>
    %54 = arith.mulf %52, %53 : vector<128x128xf32>
    %c0_41 = arith.constant 0 : index
    %c0_42 = arith.constant 0 : index
    %55 = vector.load %arg18[%c0_41, %c0_42] : memref<128x128xf32, #tpu.memory_space<vmem>>, vector<128x128xf32>
    %56 = arith.addf %54, %55 : vector<128x128xf32>
    %c0_43 = arith.constant 0 : index
    %c0_44 = arith.constant 0 : index
    %c0_45 = arith.constant 0 : index
    %c0_46 = arith.constant 0 : index
    %57 = vector.load %arg16[%c0_43, %c0_44, %c0_45, %c0_46] : memref<1x1x128x128xf32, #tpu.memory_space<vmem>>, vector<1x1x128x128xf32>
    %58 = vector.shape_cast %57 : vector<1x1x128x128xf32> to vector<128x128xf32>
    %59 = vector.shape_cast %56 : vector<128x128xf32> to vector<1x1x128x128xf32>
    tpu.vector_store %arg16[%c0_43, %c0_44, %c0_45, %c0_46], %59 {strides = array<i32>} : memref<1x1x128x128xf32, #tpu.memory_space<vmem>>, vector<1x1x128x128xf32>,
    return
  }
  func.func @transform_0(%arg0: i32, %arg1: i32, %arg2: i32) -> (i32, i32, i32) {
    %c0_i32 = arith.constant 0 : i32
    %c0_i32_0 = arith.constant 0 : i32
    %c0_i32_1 = arith.constant 0 : i32
    return %arg0, %c0_i32, %c0_i32_0 : i32, i32, i32
  }
  func.func @transform_1(%arg0: i32, %arg1: i32, %arg2: i32) -> (i32, i32, i32) {
    %c0_i32 = arith.constant 0 : i32
    %c0_i32_0 = arith.constant 0 : i32
    %c0_i32_1 = arith.constant 0 : i32
    return %arg2, %c0_i32, %c0_i32_0 : i32, i32, i32
  }
  func.func @transform_2(%arg0: i32, %arg1: i32, %arg2: i32) -> (i32, i32, i32) {
    %c0_i32 = arith.constant 0 : i32
    %c0_i32_0 = arith.constant 0 : i32
    %c0_i32_1 = arith.constant 0 : i32
    return %arg2, %c0_i32, %c0_i32_0 : i32, i32, i32
  }
  func.func @transform_3(%arg0: i32, %arg1: i32, %arg2: i32) -> (i32, i32, i32) {
    %c0_i32 = arith.constant 0 : i32
    %c0_i32_0 = arith.constant 0 : i32
    %c0_i32_1 = arith.constant 0 : i32
    return %arg2, %c0_i32, %c0_i32_0 : i32, i32, i32
  }
  func.func @transform_4(%arg0: i32, %arg1: i32, %arg2: i32) -> (i32, i32, i32) {
    %c0_i32 = arith.constant 0 : i32
    %c0_i32_0 = arith.constant 0 : i32
    %c0_i32_1 = arith.constant 0 : i32
    return %arg2, %c0_i32, %c0_i32_0 : i32, i32, i32
  }
  func.func @transform_5(%arg0: i32, %arg1: i32, %arg2: i32) -> (i32, i32, i32) {
    %c0_i32 = arith.constant 0 : i32
    %c0_i32_0 = arith.constant 0 : i32
    %c0_i32_1 = arith.constant 0 : i32
    return %arg2, %c0_i32, %c0_i32_0 : i32, i32, i32
  }
  func.func @transform_6(%arg0: i32, %arg1: i32, %arg2: i32) -> (i32, i32, i32) {
    %c0_i32 = arith.constant 0 : i32
    %c0_i32_0 = arith.constant 0 : i32
    %c0_i32_1 = arith.constant 0 : i32
    return %arg2, %c0_i32, %c0_i32_0 : i32, i32, i32
  }
  func.func @transform_7(%arg0: i32, %arg1: i32, %arg2: i32) -> (i32, i32, i32) {
    %c0_i32 = arith.constant 0 : i32
    %c0_i32_0 = arith.constant 0 : i32
    %c0_i32_1 = arith.constant 0 : i32
    return %arg2, %c0_i32, %c0_i32_0 : i32, i32, i32
  }
  func.func @transform_8(%arg0: i32, %arg1: i32, %arg2: i32) -> (i32, i32, i32) {
    %c0_i32 = arith.constant 0 : i32
    %c0_i32_0 = arith.constant 0 : i32
    %c0_i32_1 = arith.constant 0 : i32
    return %arg2, %c0_i32, %c0_i32_0 : i32, i32, i32
  }
  func.func @transform_9(%arg0: i32, %arg1: i32, %arg2: i32) -> (i32, i32) {
    %c0_i32 = arith.constant 0 : i32
    %c0_i32_0 = arith.constant 0 : i32
    %c0_i32_1 = arith.constant 0 : i32
    return %c0_i32, %c0_i32_0 : i32, i32
  }
  func.func @transform_10(%arg0: i32, %arg1: i32, %arg2: i32) -> (i32, i32) {
    %c0_i32 = arith.constant 0 : i32
    %c0_i32_0 = arith.constant 0 : i32
    %c0_i32_1 = arith.constant 0 : i32
    return %c0_i32, %c0_i32_0 : i32, i32
  }
  func.func @transform_11(%arg0: i32, %arg1: i32, %arg2: i32) -> (i32, i32, i32) {
    %c0_i32 = arith.constant 0 : i32
    %c0_i32_0 = arith.constant 0 : i32
    return %arg0, %arg1, %c0_i32 : i32, i32, i32
  }
  func.func @transform_12(%arg0: i32, %arg1: i32, %arg2: i32) -> (i32, i32, i32) {
    %c0_i32 = arith.constant 0 : i32
    %c0_i32_0 = arith.constant 0 : i32
    %c0_i32_1 = arith.constant 0 : i32
    return %arg0, %c0_i32, %c0_i32_0 : i32, i32, i32
  }
  func.func @transform_13(%arg0: i32, %arg1: i32, %arg2: i32) -> (i32, i32, i32, i32) {
    %c0_i32 = arith.constant 0 : i32
    %c0_i32_0 = arith.constant 0 : i32
    return %arg0, %arg2, %arg1, %c0_i32 : i32, i32, i32, i32
  }
}

</mosaic_0001>

<bundles_post_ra>
// kernel: tpu_custom_call.1
= control target key start
LH: loop header
LB: loop body
LE: loop exit
PB: predicated region body
PF: predicated region fallthrough
CT: control target
= control target key end

     0   :  { %s3540_s0 = inlined_call_operand.vmem [shape: bf16[2,128,32], index: 0, kind: input, shape index: {}]   ;;  %s3541_s1 = inlined_call_operand.vmem [shape: bf16[2,32,16], index: 1, kind: input, shape index: {}]   ;;  %s3542_s2 = inlined_call_operand.vmem [shape: bf16[2,32,16], index: 2, kind: input, shape index: {}]   ;;  %s3543_s3 = inlined_call_operand.vmem [shape: bf16[2,32,16], index: 3, kind: input, shape index: {}]   ;;  %s3544_s4 = inlined_call_operand.vmem [shape: bf16[2,32,16], index: 4, kind: input, shape index: {}]   ;;  %s3545_s5 = inlined_call_operand.vmem [shape: f32[2,1,16], index: 5, kind: input, shape index: {}]   ;;  %s3546_s6 = inlined_call_operand.vmem [shape: f32[2,1,16], index: 6, kind: input, shape index: {}]   ;;  %s3547_s7 = inlined_call_operand.vmem [shape: f32[2,1,16], index: 7, kind: input, shape index: {}]   ;;  %s3548_s8 = inlined_call_operand.vmem [shape: f32[2,1,16], index: 8, kind: input, shape index: {}]   ;;  %s3549_s9 = inlined_call_operand.vmem [shape: f32[128,16], index: 9, kind: input, shape index: {}]   ;;  %s3550_s10 = inlined_call_operand.vmem [shape: f32[128,16], index: 10, kind: input, shape index: {}]   ;;  %s3551_s11 = inlined_call_operand.vmem [shape: f32[2,128,1], index: 11, kind: input, shape index: {}]   ;;  %s3552_s12 = inlined_call_operand.vmem [shape: f32[2,1,128], index: 12, kind: input, shape index: {}]   ;;  %s3553_s13 = inlined_call_operand.hbm [shape: f32[2,2,128,128], index: 13, kind: output, shape index: {}]  }
   0x1   :  { %3574 = sst [smem:[#allocation22_spill]] %s3540_s0 }
   0x2   :  { %3575 = sst [smem:[#allocation23_spill]] %s3541_s1 }
   0x3   :  { %3576 = sst [smem:[#allocation24_spill]] %s3542_s2 }
   0x4   :  { %3577 = sst [smem:[#allocation25_spill]] %s3543_s3 }
   0x5   :  { %3578 = sst [smem:[#allocation26_spill]] %s3549_s9 }
   0x6   :  { %3579 = sst [smem:[#allocation27_spill]] %s3550_s10 }
   0x7   :  { %3580 = sst [smem:[#allocation28_spill]] %s3553_s13 }
   0x8   :  { %18 = vsyncpa [#allocation5], 0 }
   0x9   :  { %20 = vsyncpa [#allocation5 + $0x1], 0  ;;  %s2783_s25 = smov 0   ;;  %s2785_s26 = smov 0  }
   0xa   :  { %s2787_s27 = smov 0   ;;  %s2789_s28 = smov 0  }
   0xb   :  { %s2791_s29 = smov 0   ;;  %s2793_s30 = smov 0  }
   0xc   :  { %s2795_s14 = smov 0   ;;  %s2797_s15 = smov 0  }
   0xd LB: > { %3581 = sst [smem:[#allocation7_spill]] %s2678_s25  ;;  %s2219_s16 = sadd.s32 4294967295, %s2706_s15   ;;  %s2706_s15 = sphi %s2797_s15, %s26_s15   ;;  %s2702_s14 = sphi %s2795_s14, %s3623_s14   ;;  %s2698_s30 = sphi %s2793_s30, %s3622_s30   ;;  %s2694_s29 = sphi %s2791_s29, %s3621_s29   ;;  %s2690_s28 = sphi %s2789_s28, %s3620_s28   ;;  %s2686_s27 = sphi %s2787_s27, %s3619_s27   ;;  %s2682_s26 = sphi %s2785_s26, %s3618_s26   ;;  %s2678_s25 = sphi %s2783_s25, %s3617_s25  }
   0xe   : > { %3582 = sst [smem:[#allocation8_spill]] %s2682_s26  ;;  %s2220_s17 = sadd.s32 4294967294, %s2706_s15  }
   0xf   : > { %3583 = sst [smem:[#allocation9_spill]] %s2686_s27  ;;  %s38_s18 = sadd.s32 1, %s2698_s30 }
  0x10   : > { %3584 = sst [smem:[#allocation10_spill]] %s2694_s29  ;;  %p39_p0 = scmp.ge.s32.totalorder %s38_s18, 2 }
  0x11   : > { %3585 = sst [smem:[#allocation11_spill]] %s2698_s30  ;;  %s45_s19 = sadd.s32 1, %s2702_s14 }
  0x12   : > { %3586 = sst [smem:[#allocation12_spill]] %s2702_s14  ;;  %p396_p1 = scmp.ne.s32.totalorder %s2686_s27, %s2682_s26 }
  0x13   : > { %3587 = sst [smem:[#allocation13_spill]] %s2706_s15  ;;  %p397_p2 = scmp.eq.s32.totalorder %s2219_s16, 3 }
  0x14   : > { %s3625_s18 = smov (%p39_p0, %s38_s18), 0  ;;  %s3627_s19 = smov (!%p39_p0, %s45_s19), %s2702_s14 }
  0x15   : > { %3588 = sst [smem:[#allocation14_spill]] %s3625_s18  ;;  %s380_s20 = ssub.s32 %s2698_s30, %s3625_s18 }
  0x16   : > { %p2834_p3 = por %p397_p2, %p396_p1  ;;  %p47_p4 = scmp.ge.s32.totalorder %s3627_s19, 2 }
  0x17   : > { %p402_p5 = scmp.ne.s32.totalorder %s2682_s26, %s2678_s25  ;;  %p403_p6 = scmp.eq.s32.totalorder %s2220_s17, 3 }
  0x18   : > { %s3589_s21 = scalar_select %p2834_p3, 1, 0 }
  0x19   : > { %p2223_p7 = scmp.ge.s32.totalorder %s2706_s15, 1  ;;  %s3629_s19 = smov (%p47_p4, %s3627_s19), 0 }
  0x1a   : > { %3590 = sst [smem:[#allocation15_spill]] %s3589_s21  ;;  %p2843_p8 = por %p403_p6, %p402_p5 }
  0x1b   : > { %3591 = sst [smem:[#allocation16_spill]] %s3629_s19  ;;  %p510_p9 = scmp.lt.s32.totalorder %s2706_s15, 5 }
  0x1c   : > { %s3592_s22 = scalar_select %p2843_p8, 1, 0 }
  0x1d   : > { %s379_s23 = ssub.s32 %s2702_s14, %s3629_s19  ;;  %s386_s24 = sadd.s32 1, %s2686_s27 }
  0x1e   : > { %3593 = sst [smem:[#allocation17_spill]] %s3592_s22  ;;  %s381_s16 = sor.u32 %s380_s20, %s379_s23 }
  0x1f   : > { %p511_p10 = pnand %p2223_p7, %p510_p9  ;;  %p384_p11 = scmp.eq.s32.totalorder %s381_s16, 0 }
  0x21   : > { %s2852_s18 = scalar_select %p384_p11, %s2686_s27, %s386_s24  }
  0x22   : > { %514 = sbr.rel (%p511_p10) target bundleno = 776 (0x308), region = 72 }
  0x23   : > { %3594 = sst [smem:[#allocation18_spill]] %s2852_s18 }
  0x29   : > { %s3559_s17 = sand.u32 1, %s2682_s26   ;;  %p598_p12 = scmp.lt.s32.totalorder %s2694_s29, 1 }
  0x2a   : > { %s2224_s30 = sshll.u32 %s3559_s17, 7  ;;  %p603_p13 = scmp.lt.s32.totalorder %s2690_s28, 1 }
  0x2b   : > { %s2860_s22 = scalar_select %p598_p12, %s2694_s29, 1 }
  0x2c   : > { %s2863_s20 = scalar_select %p603_p13, %s2690_s28, 1 }
  0x2d   : > { %s2329_s23 = sshll.u32 %s2860_s22, 6  ;;  %s2334_s24 = sshll.u32 %s2860_s22, 7 }
  0x2e   : > { %s3595_s0 = sld [smem:[#allocation22_spill]]  ;;  %s2330_s17 = sshll.u32 %s2863_s20, 4 }
  0x2f   : > { %s3596_s1 = sld [smem:[#allocation23_spill]]  ;;  %s3598_s2 = sld [smem:[#allocation24_spill]] }
  0x30   : > { %s3600_s3 = sld [smem:[#allocation25_spill]]  ;;  %s628_s13 = scalar_lea.vmem %s3546_s6, %s2863_s20 }
  0x31   : > { %s647_s16 = scalar_lea.vmem %s3552_s12, %s2860_s22  ;;  %s2918_s27 = scalar_lea.vmem [#allocation4], %s2224_s30 }
  0x32   : > { %p2237_p0 = scmp.ne.s32.totalorder %s2690_s28, 0 }
  0x33   : > { %v2708_v2 = vmov (!%p2237_p0), 0   ;;  %v806_v17 = vlaneseq (!%p2237_p0)  ;;  %v2709_v25 = vmov (!%p2237_p0), 0.0   ;;  %v2958_v28 = vld [vmem:[%s647_s16] ss:$0 sm:$0xff] (!%p2237_p0) }
  0x34   : > { %s2870_s14 = scalar_lea.vmem %s3595_s0, %s2329_s23  ;;  %s2891_s23 = scalar_lea.vmem %s3544_s4, %s2330_s17  ;;  %2587 = vset.pattern.permute.xlu1 (!%p2237_p0), %v2708_v2  ;;  %2586 = vset.pattern.permute.xlu0 (!%p2237_p0), %v2708_v2 }
  0x35   : > { %s2876_s25 = scalar_lea.vmem %s3596_s1, %s2330_s17  ;;  %s2881_s21 = scalar_lea.vmem %s3598_s2, %s2330_s17  ;;  %v2937_v18 = vshrl.u32 (!%p2237_p0), %v806_v17, 7  ;;  %v2940_v20 = vand.u32 (!%p2237_p0), 127, %v806_v17 }
  0x36   : > { %3597 = sst [smem:[#allocation19_spill]] %s2876_s25  ;;  %s2886_s10 = scalar_lea.vmem %s3600_s3, %s2330_s17 }
  0x37   : > { %3599 = sst [smem:[#allocation20_spill]] %s2881_s21  ;;  %s631_s21 = scalar_lea.vmem %s3547_s7, %s2863_s20  ;;  %v809_v19 = vadd.s32 (!%p2237_p0), 16, %v2937_v18  ;;  %v810_v21 = vadd.s32 (!%p2237_p0), 24, %v2937_v18  ;;  %v808_v22 = vadd.s32 (!%p2237_p0), 8, %v2937_v18  ;;  %vm842_vm1 = vcmp.gt.s32.totalorder (!%p2237_p0), %v2937_v18, %v2940_v20 }
  0x38   : > { %s634_s3 = scalar_lea.vmem %s3548_s8, %s2863_s20  ;;  %s2912_s17 = scalar_lea.vmem %s3551_s11, %s2334_s24  ;;  %v812_v23 = vadd.s32 (!%p2237_p0), 40, %v2937_v18  ;;  %v811_v24 = vadd.s32 (!%p2237_p0), 32, %v2937_v18  ;;  %v2239_v27 = vsel (!%p2237_p0), %vm842_vm1, 1.0, %v2709_v25  ;;  %v814_v31 = vadd.s32 (!%p2237_p0), 56, %v2937_v18 }
  0x39   : > { %654 = sbr.rel (%p2237_p0) target bundleno = 221 (0xdd), region = 76  ;;  %v657_v0 = vld [vmem:[%s2912_s17 + $0x10] sm:$0xff] (!%p2237_p0)  ;;  %v655_v1 = vld [vmem:[%s2912_s17] sm:$0xff] (!%p2237_p0)  ;;  %v658_v3 = vld [vmem:[%s2912_s17 + $0x18] sm:$0xff] (!%p2237_p0)  ;;  %vm844_vm0 = vcmp.gt.s32.totalorder (!%p2237_p0), %v809_v19, %v2940_v20  ;;  %vm845_vm2 = vcmp.gt.s32.totalorder (!%p2237_p0), %v810_v21, %v2940_v20  ;;  %vm843_vm3 = vcmp.gt.s32.totalorder (!%p2237_p0), %v808_v22, %v2940_v20  ;;  %v813_v32 = vadd.s32 (!%p2237_p0), 48, %v2937_v18 }
  0x3a   : > { %684 = vperm.xlu1 (!%p2237_p0), %2587, %v657_v0   ;;  %674 = vperm.xlu0 (!%p2237_p0), %2586, %v655_v1   ;;  %v656_v4 = vld [vmem:[%s2912_s17 + $0x8] sm:$0xff] (!%p2237_p0)  ;;  %v659_v6 = vld [vmem:[%s2912_s17 + $0x20] sm:$0xff] (!%p2237_p0)  ;;  %v662_v7 = vld [vmem:[%s2912_s17 + $0x38] sm:$0xff] (!%p2237_p0)  ;;  %v2241_v26 = vsel (!%p2237_p0), %vm844_vm0, 1.0, %v2709_v25  ;;  %v2242_v29 = vsel (!%p2237_p0), %vm845_vm2, 1.0, %v2709_v25  ;;  %v2240_v30 = vsel (!%p2237_p0), %vm843_vm3, 1.0, %v2709_v25  ;;  %vm847_vm4 = vcmp.gt.s32.totalorder (!%p2237_p0), %v812_v23, %v2940_v20 }
  0x3b   : > { %v660_v5 = vld [vmem:[%s2912_s17 + $0x28] sm:$0xff] (!%p2237_p0)  ;;  %v661_v8 = vld [vmem:[%s2912_s17 + $0x30] sm:$0xff] (!%p2237_p0)  ;;  %v663_v10 = vld [vmem:[%s2912_s17 + $0x40] sm:$0xff] (!%p2237_p0)  ;;  %v892_v33 = vadd.f32 (!%p2237_p0), 1.0, %v2241_v26  ;;  %v890_v34 = vadd.f32 (!%p2237_p0), 1.0, %v2239_v27  ;;  %vm846_vm5 = vcmp.gt.s32.totalorder (!%p2237_p0), %v811_v24, %v2940_v20  ;;  %v816_v37 = vadd.s32 (!%p2237_p0), 72, %v2937_v18 }
  0x3c   : > { %v664_v9 = vld [vmem:[%s2912_s17 + $0x48] sm:$0xff] (!%p2237_p0)  ;;  %v666_v11 = vld [vmem:[%s2912_s17 + $0x58] sm:$0xff] (!%p2237_p0)  ;;  %v665_v12 = vld [vmem:[%s2912_s17 + $0x50] sm:$0xff] (!%p2237_p0)  ;;  %v815_v38 = vadd.s32 (!%p2237_p0), 64, %v2937_v18  ;;  %v893_v41 = vadd.f32 (!%p2237_p0), 1.0, %v2242_v29  ;;  %v891_v42 = vadd.f32 (!%p2237_p0), 1.0, %v2240_v30  ;;  %vm849_vm6 = vcmp.gt.s32.totalorder (!%p2237_p0), %v814_v31, %v2940_v20 }
  0x3d   : > { %v668_v13 = vld [vmem:[%s2912_s17 + $0x68] sm:$0xff] (!%p2237_p0)  ;;  %v667_v14 = vld [vmem:[%s2912_s17 + $0x60] sm:$0xff] (!%p2237_p0)  ;;  %v670_v15 = vld [vmem:[%s2912_s17 + $0x78] sm:$0xff] (!%p2237_p0)  ;;  %v2244_v43 = vsel (!%p2237_p0), %vm847_vm4, 1.0, %v2709_v25  ;;  %v2243_v44 = vsel (!%p2237_p0), %vm846_vm5, 1.0, %v2709_v25  ;;  %vm848_vm7 = vcmp.gt.s32.totalorder (!%p2237_p0), %v813_v32, %v2940_v20  ;;  %vm851_vm8 = vcmp.gt.s32.totalorder (!%p2237_p0), %v816_v37, %v2940_v20 }
  0x3e   : > { %689 = vperm.xlu1 (!%p2237_p0), %2587, %v658_v3   ;;  %679 = vperm.xlu0 (!%p2237_p0), %2586, %v656_v4   ;;  %v669_v16 = vld [vmem:[%s2912_s17 + $0x70] sm:$0xff] (!%p2237_p0)  ;;  %vm850_vm9 = vcmp.gt.s32.totalorder (!%p2237_p0), %v815_v38, %v2940_v20  ;;  %v818_v51 = vadd.s32 (!%p2237_p0), 88, %v2937_v18  ;;  %v817_v52 = vadd.s32 (!%p2237_p0), 80, %v2937_v18  ;;  %v895_v57 = vadd.f32 (!%p2237_p0), 1.0, %v2244_v43 }
  0x3f   : > { %v894_v58 = vadd.f32 (!%p2237_p0), 1.0, %v2243_v44  ;;  %v2246_v59 = vsel (!%p2237_p0), %vm849_vm6, 1.0, %v2709_v25  ;;  %v2245_v60 = vsel (!%p2237_p0), %vm848_vm7, 1.0, %v2709_v25  ;;  %v2248_v3 = vsel (!%p2237_p0), %vm851_vm8, 1.0, %v2709_v25 }
  0x40   : > { %v2247_v4 = vsel %vm850_vm9, 1.0, %v2709_v25  ;;  %vm853_vm10 = vcmp.gt.s32.totalorder %v818_v51, %v2940_v20  ;;  %vm852_vm11 = vcmp.gt.s32.totalorder %v817_v52, %v2940_v20  ;;  %v899_v21 = vadd.f32 1.0, %v2248_v3 }
  0x41   : > { %v898_v22 = vadd.f32 1.0, %v2247_v4  ;;  %v2250_v23 = vsel %vm853_vm10, 1.0, %v2709_v25  ;;  %v2249_v24 = vsel %vm852_vm11, 1.0, %v2709_v25  ;;  %v822_v31 = vadd.s32 120, %v2937_v18 }
  0x42   : > { %699 = vperm.xlu1 %2587, %v660_v5   ;;  %694 = vperm.xlu0 %2586, %v659_v6   ;;  %v821_v32 = vadd.s32 112, %v2937_v18 }
  0x43   : > { %vm857_vm14 = vcmp.gt.s32.totalorder %v822_v31, %v2940_v20 }
  0x44   : > { %vm856_vm15 = vcmp.gt.s32.totalorder %v821_v32, %v2940_v20 }
  0x46   : > { %709 = vperm.xlu1 %2587, %v662_v7   ;;  %704 = vperm.xlu0 %2586, %v661_v8  }
  0x4a   : > { %719 = vperm.xlu1 %2587, %v664_v9   ;;  %714 = vperm.xlu0 %2586, %v663_v10   ;;  %v897_v9 = vadd.f32 1.0, %v2246_v59  ;;  %v896_v10 = vadd.f32 1.0, %v2245_v60  ;;  %v2253_v59 = vsel %vm856_vm15, 1.0, %v2709_v25 }
  0x4e   : > { %729 = vperm.xlu1 %2587, %v666_v11   ;;  %724 = vperm.xlu0 %2586, %v665_v12   ;;  %v820_v11 = vadd.s32 104, %v2937_v18  ;;  %v819_v12 = vadd.s32 96, %v2937_v18 }
  0x50   : > { %vm855_vm12 = vcmp.gt.s32.totalorder %v820_v11, %v2940_v20  ;;  %vm854_vm13 = vcmp.gt.s32.totalorder %v819_v12, %v2940_v20 }
  0x51   : > { %v2252_v18 = vsel %vm855_vm12, 1.0, %v2709_v25 }
  0x52   : > { %739 = vperm.xlu1 %2587, %v668_v13   ;;  %734 = vperm.xlu0 %2586, %v667_v14  }
  0x56   : > { %749 = vperm.xlu1 %2587, %v670_v15   ;;  %744 = vperm.xlu0 %2586, %v669_v16  }
  0xb9   : > { %v685_v35 = vpop.permute.xlu1 %684  ;;  %v675_v36 = vpop.permute.xlu0 %674 }
  0xba   : > { %v760_v39 = vmul.f32 %v2958_v28, %v685_v35  ;;  %v758_v40 = vmul.f32 %v2958_v28, %v675_v36 }
  0xbc   : > { %v776_v45 = vmul.f32 0.25, %v760_v39  ;;  %v908_v46 = vsub.f32 %v760_v39, %v892_v33  ;;  %v774_v47 = vmul.f32 0.25, %v758_v40  ;;  %v906_v48 = vsub.f32 %v758_v40, %v890_v34 }
  0xbd   : > { %v690_v49 = vpop.permute.xlu1 %689  ;;  %v680_v50 = vpop.permute.xlu0 %679  ;;  %v901_v39 = vadd.f32 1.0, %v2250_v23  ;;  %v900_v40 = vadd.f32 1.0, %v2249_v24 }
  0xbe   : > { %792 = vst [vmem:[#allocation2 + $0x10] sm:$0xff] %v776_v45  ;;  %v924_v53 = vmul.f32 2.5e+11, %v908_v46  ;;  %790 = vst [vmem:[#allocation2] sm:$0xff] %v774_v47  ;;  %v922_v54 = vmul.f32 2.5e+11, %v906_v48  ;;  %v761_v55 = vmul.f32 %v2958_v28, %v690_v49  ;;  %v759_v56 = vmul.f32 %v2958_v28, %v680_v50 }
  0xbf   : > { %v2251_v45 = vsel %vm854_vm13, 1.0, %v2709_v25 }
  0xc0   : > { %940 = vst [vmem:[#allocation3 + $0x10] sm:$0xff] %v924_v53  ;;  %938 = vst [vmem:[#allocation3] sm:$0xff] %v922_v54  ;;  %v777_v61 = vmul.f32 0.25, %v761_v55  ;;  %v909_v62 = vsub.f32 %v761_v55, %v893_v41  ;;  %v775_v63 = vmul.f32 0.25, %v759_v56  ;;  %v907_v0 = vsub.f32 %v759_v56, %v891_v42 }
  0xc1   : > { %v700_v1 = vpop.permute.xlu1 %699  ;;  %v695_v2 = vpop.permute.xlu0 %694  ;;  %v903_v56 = vadd.f32 1.0, %v2252_v18 }
  0xc2   : > { %793 = vst [vmem:[#allocation2 + $0x18] sm:$0xff] %v777_v61  ;;  %v925_v5 = vmul.f32 2.5e+11, %v909_v62  ;;  %791 = vst [vmem:[#allocation2 + $0x8] sm:$0xff] %v775_v63  ;;  %v923_v6 = vmul.f32 2.5e+11, %v907_v0  ;;  %v763_v7 = vmul.f32 %v2958_v28, %v700_v1  ;;  %v762_v8 = vmul.f32 %v2958_v28, %v695_v2 }
  0xc4   : > { %941 = vst [vmem:[#allocation3 + $0x18] sm:$0xff] %v925_v5  ;;  %939 = vst [vmem:[#allocation3 + $0x8] sm:$0xff] %v923_v6  ;;  %v779_v13 = vmul.f32 0.25, %v763_v7  ;;  %v911_v14 = vsub.f32 %v763_v7, %v895_v57  ;;  %v778_v15 = vmul.f32 0.25, %v762_v8  ;;  %v910_v16 = vsub.f32 %v762_v8, %v894_v58 }
  0xc5   : > { %v710_v17 = vpop.permute.xlu1 %709  ;;  %v705_v19 = vpop.permute.xlu0 %704  ;;  %v902_v57 = vadd.f32 1.0, %v2251_v45  ;;  %v2254_v58 = vsel %vm857_vm14, 1.0, %v2709_v25  ;;  %v904_v7 = vadd.f32 1.0, %v2253_v59 }
  0xc6   : > { %795 = vst [vmem:[#allocation2 + $0x28] sm:$0xff] %v779_v13  ;;  %v927_v26 = vmul.f32 2.5e+11, %v911_v14  ;;  %794 = vst [vmem:[#allocation2 + $0x20] sm:$0xff] %v778_v15  ;;  %v926_v27 = vmul.f32 2.5e+11, %v910_v16  ;;  %v765_v29 = vmul.f32 %v2958_v28, %v710_v17  ;;  %v764_v30 = vmul.f32 %v2958_v28, %v705_v19 }
  0xc7   : > { %v905_v6 = vadd.f32 1.0, %v2254_v58 }
  0xc8   : > { %943 = vst [vmem:[#allocation3 + $0x28] sm:$0xff] %v927_v26  ;;  %942 = vst [vmem:[#allocation3 + $0x20] sm:$0xff] %v926_v27  ;;  %v781_v33 = vmul.f32 0.25, %v765_v29  ;;  %v913_v34 = vsub.f32 %v765_v29, %v897_v9  ;;  %v780_v35 = vmul.f32 0.25, %v764_v30  ;;  %v912_v36 = vsub.f32 %v764_v30, %v896_v10 }
  0xc9   : > { %v720_v37 = vpop.permute.xlu1 %719  ;;  %v715_v38 = vpop.permute.xlu0 %714 }
  0xca   : > { %797 = vst [vmem:[#allocation2 + $0x38] sm:$0xff] %v781_v33  ;;  %v929_v41 = vmul.f32 2.5e+11, %v913_v34  ;;  %796 = vst [vmem:[#allocation2 + $0x30] sm:$0xff] %v780_v35  ;;  %v928_v42 = vmul.f32 2.5e+11, %v912_v36  ;;  %v767_v43 = vmul.f32 %v2958_v28, %v720_v37  ;;  %v766_v44 = vmul.f32 %v2958_v28, %v715_v38 }
  0xcc   : > { %945 = vst [vmem:[#allocation3 + $0x38] sm:$0xff] %v929_v41  ;;  %944 = vst [vmem:[#allocation3 + $0x30] sm:$0xff] %v928_v42  ;;  %v783_v46 = vmul.f32 0.25, %v767_v43  ;;  %v915_v47 = vsub.f32 %v767_v43, %v899_v21  ;;  %v782_v48 = vmul.f32 0.25, %v766_v44  ;;  %v914_v49 = vsub.f32 %v766_v44, %v898_v22 }
  0xcd   : > { %v730_v50 = vpop.permute.xlu1 %729  ;;  %v725_v51 = vpop.permute.xlu0 %724 }
  0xce   : > { %799 = vst [vmem:[#allocation2 + $0x48] sm:$0xff] %v783_v46  ;;  %v931_v52 = vmul.f32 2.5e+11, %v915_v47  ;;  %798 = vst [vmem:[#allocation2 + $0x40] sm:$0xff] %v782_v48  ;;  %v930_v53 = vmul.f32 2.5e+11, %v914_v49  ;;  %v769_v54 = vmul.f32 %v2958_v28, %v730_v50  ;;  %v768_v55 = vmul.f32 %v2958_v28, %v725_v51 }
  0xd0   : > { %947 = vst [vmem:[#allocation3 + $0x48] sm:$0xff] %v931_v52  ;;  %946 = vst [vmem:[#allocation3 + $0x40] sm:$0xff] %v930_v53  ;;  %v785_v60 = vmul.f32 0.25, %v769_v54  ;;  %v917_v61 = vsub.f32 %v769_v54, %v901_v39  ;;  %v784_v62 = vmul.f32 0.25, %v768_v55  ;;  %v916_v63 = vsub.f32 %v768_v55, %v900_v40 }
  0xd1   : > { %v740_v0 = vpop.permute.xlu1 %739  ;;  %v735_v1 = vpop.permute.xlu0 %734 }
  0xd2   : > { %801 = vst [vmem:[#allocation2 + $0x58] sm:$0xff] %v785_v60  ;;  %v933_v2 = vmul.f32 2.5e+11, %v917_v61  ;;  %800 = vst [vmem:[#allocation2 + $0x50] sm:$0xff] %v784_v62  ;;  %v932_v3 = vmul.f32 2.5e+11, %v916_v63  ;;  %v771_v4 = vmul.f32 %v2958_v28, %v740_v0  ;;  %v770_v5 = vmul.f32 %v2958_v28, %v735_v1 }
  0xd4   : > { %949 = vst [vmem:[#allocation3 + $0x58] sm:$0xff] %v933_v2  ;;  %948 = vst [vmem:[#allocation3 + $0x50] sm:$0xff] %v932_v3  ;;  %v787_v20 = vmul.f32 0.25, %v771_v4  ;;  %v919_v25 = vsub.f32 %v771_v4, %v903_v56  ;;  %v786_v8 = vmul.f32 0.25, %v770_v5  ;;  %v918_v9 = vsub.f32 %v770_v5, %v902_v57 }
  0xd5   : > { %v750_v10 = vpop.permute.xlu1 %749  ;;  %v745_v11 = vpop.permute.xlu0 %744 }
  0xd6   : > { %803 = vst [vmem:[#allocation2 + $0x68] sm:$0xff] %v787_v20  ;;  %v935_v12 = vmul.f32 2.5e+11, %v919_v25  ;;  %802 = vst [vmem:[#allocation2 + $0x60] sm:$0xff] %v786_v8  ;;  %v934_v13 = vmul.f32 2.5e+11, %v918_v9  ;;  %v773_v14 = vmul.f32 %v2958_v28, %v750_v10  ;;  %v772_v15 = vmul.f32 %v2958_v28, %v745_v11 }
  0xd8   : > { %951 = vst [vmem:[#allocation3 + $0x68] sm:$0xff] %v935_v12  ;;  %950 = vst [vmem:[#allocation3 + $0x60] sm:$0xff] %v934_v13  ;;  %v789_v16 = vmul.f32 0.25, %v773_v14  ;;  %v921_v17 = vsub.f32 %v773_v14, %v905_v6  ;;  %v788_v19 = vmul.f32 0.25, %v772_v15  ;;  %v920_v21 = vsub.f32 %v772_v15, %v904_v7 }
  0xda   : > { %805 = vst [vmem:[#allocation2 + $0x78] sm:$0xff] %v789_v16  ;;  %v937_v22 = vmul.f32 2.5e+11, %v921_v17  ;;  %804 = vst [vmem:[#allocation2 + $0x70] sm:$0xff] %v788_v19  ;;  %v936_v23 = vmul.f32 2.5e+11, %v920_v21 }
  0xdc   : > { %953 = vst [vmem:[#allocation3 + $0x78] sm:$0xff] %v937_v22  ;;  %952 = vst [vmem:[#allocation3 + $0x70] sm:$0xff] %v936_v23 }
  0xdd PF: > { %s3601_s25 = sld [smem:[#allocation19_spill]]  ;;  %v2588_v28 = vld [vmem:[%s2886_s10] sm:$0xff]   ;;  %v2590_v26 = vld [vmem:[%s2886_s10 + $0x8] sm:$0xff]   ;;  %vm1053_vm0 = vcmask 261120   ;;  %s3602_s30 = sld [smem:[#allocation20_spill]]  ;;  %v2595_v32 = vld [vmem:[%s2870_s14 + $0x10] sm:$0xff]  }
  0xde   : > { %v2589_v24 = vld [vmem:[%s2891_s23] sm:$0xff]   ;;  %2391 = vmatprep.subr.bf16.mxu1 %v2588_v28  ;;  %v2591_v27 = vld [vmem:[%s2891_s23 + $0x8] sm:$0xff]   ;;  %v2596_v34 = vld [vmem:[%s2870_s14 + $0x18] sm:$0xff]   ;;  %s3603_s15 = sld [smem:[#allocation26_spill]]  ;;  %s3605_s17 = sld [smem:[#allocation27_spill]]  ;;  %vm1777_vm1 = vcmask 130048  }
  0xdf   : > { %2431 = vmatprep.subr.bf16.mxu0 %v2589_v24  ;;  %2392 = vmatpush3.bf16.msra.mxu1 %v2588_v28  ;;  %v2592_v29 = vld [vmem:[%s2870_s14] sm:$0xff]   ;;  %v2593_v30 = vld [vmem:[%s2870_s14 + $0x8] sm:$0xff]   ;;  %v2600_v38 = vld [vmem:[%s2870_s14 + $0x30] sm:$0xff]   ;;  %s3610_s23 = sld [smem:[#allocation8_spill]]  ;;  %s2710_s1 = smov [#allocation4]  }
  0xe0   : > { %2432 = vmatpush3.bf16.msra.mxu0 %v2589_v24  ;;  %2393 = vmatprep.subr.bf16.mxu1 %v2590_v26  ;;  %v2597_v35 = vld [vmem:[%s2870_s14 + $0x20] sm:$0xff]   ;;  %v2598_v37 = vld [vmem:[%s2870_s14 + $0x28] sm:$0xff]   ;;  %v2601_v39 = vld [vmem:[%s2870_s14 + $0x38] sm:$0xff]   ;;  %s2616_s2 = sshll.u32 %s2710_s1, 4  ;;  %s2617_s2 = int_to_ptr.vmem [resolvable:$false] %s2616_s2 }
  0xe1   : > { %2433 = vmatprep.subr.bf16.mxu0 %v2591_v27  ;;  %2395 = vmatprep.mubr.msk.bf16.mxu1 %vm1053_vm0, %v2592_v29  ;;  %v2602_v40 = vld [vmem:[%s2870_s14] sm:$0xff]   ;;  %v2603_v41 = vld [vmem:[%s2870_s14 + $0x8] sm:$0xff]   ;;  %v2605_v42 = vld [vmem:[%s2870_s14 + $0x10] sm:$0xff]  }
  0xe2   : > { %2435 = vmatprep.mubr.msk.bf16.mxu0 %vm1053_vm0, %v2592_v29  ;;  %v2606_v44 = vld [vmem:[%s2870_s14 + $0x18] sm:$0xff]   ;;  %v2607_v18 = vld [vmem:[%s2870_s14 + $0x20] sm:$0xff]   ;;  %v2608_v45 = vld [vmem:[%s2870_s14 + $0x28] sm:$0xff]  }
  0xe3   : > { %v2594_v31 = vld [vmem:[%s3601_s25] sm:$0xff]   ;;  %2394 = vmatpush3.bf16.msra.mxu1 %v2590_v26  ;;  %v2599_v33 = vld [vmem:[%s3601_s25 + $0x8] sm:$0xff]   ;;  %v2610_v46 = vld [vmem:[%s2870_s14 + $0x30] sm:$0xff]   ;;  %s2618_s25 = scalar_lea.vmem %s2617_s2, 4096 }
  0xe4   : > { %2434 = vmatpush3.bf16.msra.mxu0 %v2591_v27  ;;  %2411 = vmatprep.subr.bf16.mxu1 %v2594_v31  ;;  %v2604_v36 = vld [vmem:[%s3602_s30] sm:$0xff]   ;;  %v2609_v43 = vld [vmem:[%s3602_s30 + $0x8] sm:$0xff]   ;;  %v2611_v47 = vld [vmem:[%s2870_s14 + $0x38] sm:$0xff]   ;;  %s3604_s9 = smov %s3603_s15  ;;  %s3607_s30 = scalar_lea.vmem %s3545_s5, %s2863_s20 }
  0xe5   : > { %v3093_v48 = vld [vmem:[%s631_s21] ss:$0 sm:$0xff]  ;;  %v3105_v51 = vld [vmem:[%s3603_s15 + $0x10] sm:$0xff]  ;;  %v3128_v62 = vld [vmem:[%s3604_s9 + $0x18] sm:$0xff]  ;;  %s3609_s20 = sld [smem:[#allocation10_spill]]  ;;  %s3612_s21 = sld [smem:[#allocation28_spill]] }
  0xe6   : > { %2396 = vmatmul.mubr.msk.bf16.vlgmr.msra.gmra.mrb[0].mxu1 %vm1053_vm0, %v2593_v30  ;;  %v3100_v49 = vld [vmem:[%s634_s3] ss:$0 sm:$0xff]  ;;  %v3111_v54 = vld [vmem:[%s3605_s17 + $0x10] sm:$0xff]  ;;  %v3136_v3 = vld [vmem:[%s3605_s17 + $0x18] sm:$0xff]  ;;  %s3613_s3 = sand.u32 1, %s3610_s23  }
  0xe7   : > { %2436 = vmatmul.mubr.msk.bf16.vlgmr.msra.gmra.mrb[0].mxu0 %vm1053_vm0, %v2593_v30  ;;  %2412 = vmatpush3.bf16.msra.mxu1 %v2594_v31  ;;  %v3116_v56 = vld [vmem:[%s3604_s9] sm:$0xff]  ;;  %v3141_v5 = vld [vmem:[%s3604_s9 + $0x8] sm:$0xff]  ;;  %v3161_v22 = vld [vmem:[%s3604_s9 + $0x30] sm:$0xff]  ;;  %s3488_s0 = scalar_lea.sflag [#allocation5], %s3613_s3 }
  0xe8   : > { %2399 = vmatprep.mubr.msk.bf16.mxu1 %vm1053_vm0, %v2595_v32  ;;  %2439 = vmatprep.mubr.msk.bf16.mxu0 %vm1053_vm0, %v2595_v32  ;;  %v3123_v60 = vld [vmem:[%s3605_s17] sm:$0xff]  ;;  %v3150_v9 = vld [vmem:[%s3605_s17 + $0x8] sm:$0xff]  ;;  %v3167_v26 = vld [vmem:[%s3605_s17 + $0x30] sm:$0xff] }
  0xe9   : > { %2413 = vmatprep.subr.bf16.mxu1 %v2599_v33  ;;  %v3172_v29 = vld [vmem:[%s3604_s9 + $0x20] sm:$0xff] }
  0xeb   : > { %2414 = vmatpush3.bf16.msra.mxu1 %v2599_v33  ;;  %s2325_s22 = sshll.u32 %s3609_s20, 5 }
  0xec   : > { %2451 = vmatprep.subr.bf16.mxu1 %v2604_v36 }
  0xee   : > { %2400 = vmatmul.mubr.msk.bf16.gmra.mrb[4].mxu1 %vm1053_vm0, %v2596_v34 }
  0xef   : > { %2440 = vmatmul.mubr.msk.bf16.gmra.mrb[4].mxu0 %vm1053_vm0, %v2596_v34  ;;  %2403 = vmatprep.mubr.msk.bf16.mxu1 %vm1053_vm0, %v2597_v35  ;;  %v3181_v34 = vld [vmem:[%s3605_s17 + $0x20] sm:$0xff] }
  0xf0   : > { %2443 = vmatprep.mubr.msk.bf16.mxu0 %vm1053_vm0, %v2597_v35 }
  0xf6   : > { %2404 = vmatmul.mubr.msk.bf16.gmra.mrb[8].mxu1 %vm1053_vm0, %v2598_v37 }
  0xf7   : > { %2444 = vmatmul.mubr.msk.bf16.gmra.mrb[8].mxu0 %vm1053_vm0, %v2598_v37  ;;  %2407 = vmatprep.mubr.msk.bf16.mxu1 %vm1053_vm0, %v2600_v38 }
  0xf8   : > { %2447 = vmatprep.mubr.msk.bf16.mxu0 %vm1053_vm0, %v2600_v38 }
  0xfe   : > { %2408 = vmatmul.mubr.msk.bf16.gmra.mrb[12].mxu1 %vm1053_vm0, %v2601_v39 }
  0xff   : > { %2448 = vmatmul.mubr.msk.bf16.gmra.mrb[12].mxu0 %vm1053_vm0, %v2601_v39  ;;  %2415 = vmatprep.mubr.msk.bf16.mxu1 %vm1053_vm0, %v2602_v40 }
 0x106   : > { %2416 = vmatmul.mubr.msk.bf16.vlgmr.msra.gmra.mrb[16].mxu1 %vm1053_vm0, %v2603_v41 }
 0x107   : > { %2452 = vmatpush3.bf16.msra.mxu1 %v2604_v36  ;;  %2419 = vmatprep.mubr.msk.bf16.mxu1 %vm1053_vm0, %v2605_v42  ;;  %v3186_v36 = vld [vmem:[%s3604_s9 + $0x38] sm:$0xff] }
 0x108   : > { %2453 = vmatprep.subr.bf16.mxu1 %v2609_v43 }
 0x10b   : > { %2454 = vmatpush3.bf16.msra.mxu1 %v2609_v43 }
 0x10e   : > { %2420 = vmatmul.mubr.msk.bf16.gmra.mrb[20].mxu1 %vm1053_vm0, %v2606_v44 }
 0x10f   : > { %2423 = vmatprep.mubr.msk.bf16.mxu1 %vm1053_vm0, %v2607_v18 }
 0x116   : > { %2424 = vmatmul.mubr.msk.bf16.gmra.mrb[24].mxu1 %vm1053_vm0, %v2608_v45 }
 0x117   : > { %2427 = vmatprep.mubr.msk.bf16.mxu1 %vm1053_vm0, %v2610_v46 }
 0x11e   : > { %2428 = vmatmul.mubr.msk.bf16.gmra.mrb[28].mxu1 %vm1053_vm0, %v2611_v47 }
 0x11f   : > { %2455 = vmatprep.mubr.msk.bf16.mxu1 %vm1053_vm0, %v2602_v40 }
 0x126   : > { %2456 = vmatmul.mubr.msk.bf16.vlgmr.msra.gmra.mrb[32].mxu1 %vm1053_vm0, %v2603_v41 }
 0x127   : > { %2459 = vmatprep.mubr.msk.bf16.mxu1 %vm1053_vm0, %v2605_v42  ;;  %v3194_v42 = vld [vmem:[%s3605_s17 + $0x38] sm:$0xff] }
 0x12e   : > { %2460 = vmatmul.mubr.msk.bf16.gmra.mrb[36].mxu1 %vm1053_vm0, %v2606_v44  ;;  %v3199_v44 = vld [vmem:[%s3604_s9 + $0x28] sm:$0xff] }
 0x12f   : > { %2463 = vmatprep.mubr.msk.bf16.mxu1 %vm1053_vm0, %v2607_v18 }
 0x136   : > { %2464 = vmatmul.mubr.msk.bf16.gmra.mrb[40].mxu1 %vm1053_vm0, %v2608_v45 }
 0x137   : > { %2467 = vmatprep.mubr.msk.bf16.mxu1 %vm1053_vm0, %v2610_v46 }
 0x13e   : > { %2468 = vmatmul.mubr.msk.bf16.gmra.mrb[44].mxu1 %vm1053_vm0, %v2611_v47 }
 0x1b9   : > { %v2397_v50 = vpop.f32.mrb[0].mxu1 }
 0x1ba   : > { %v1121_v52 = vadd.f32 %v2397_v50, %v3093_v48  ;;  %v2437_v53 = vpop.f32.mrb[0].mxu0  ;;  %v1112_v55 = vpop.f32.mrb[1].mxu1 }
 0x1bb   : > { %v1425_v57 = vadd.f32 %v2437_v53, %v3100_v49  ;;  %v1113_v58 = vadd.f32 %v3093_v48, %v1112_v55  ;;  %v1416_v59 = vpop.f32.mrb[1].mxu0  ;;  %v2398_v61 = vpop.f32.mrb[2].mxu1 }
 0x1bc   : > { %v1651_v63 = vmul.f32 %v3105_v51, %v1121_v52  ;;  %v1417_v0 = vadd.f32 %v3100_v49, %v1416_v59  ;;  %v1124_v1 = vadd.f32 %v2398_v61, %v3093_v48  ;;  %v2438_v2 = vpop.f32.mrb[2].mxu0  ;;  %v1115_v4 = vpop.f32.mrb[3].mxu1  ;;  %v3208_v52 = vld [vmem:[%s3605_s17 + $0x28] sm:$0xff] }
 0x1bd   : > { %v1683_v6 = vmul.f32 %v3111_v54, %v1425_v57  ;;  %v1649_v7 = vmul.f32 %v3116_v56, %v1113_v58  ;;  %v1428_v20 = vadd.f32 %v2438_v2, %v3100_v49  ;;  %v1116_v25 = vadd.f32 %v3093_v48, %v1115_v4  ;;  %v1419_v8 = vpop.f32.mrb[3].mxu0 }
 0x1be   : > { %v1681_v10 = vmul.f32 %v3123_v60, %v1417_v0  ;;  %v1652_v11 = vmul.f32 %v3128_v62, %v1124_v1  ;;  %v1420_v12 = vadd.f32 %v3100_v49, %v1419_v8  ;;  %v3229_v8 = vld [vmem:[%s3605_s17 + $0x50] sm:$0xff] }
 0x1bf   : > { %v1699_v13 = vadd.f32 %v1683_v6, %v1651_v63  ;;  %v1684_v14 = vmul.f32 %v3136_v3, %v1428_v20  ;;  %v1650_v15 = vmul.f32 %v3141_v5, %v1116_v25  ;;  %v3223_v6 = vld [vmem:[%s3604_s9 + $0x50] sm:$0xff] }
 0x1c0   : > { %v1697_v16 = vadd.f32 %v1681_v10, %v1649_v7  ;;  %v1682_v17 = vmul.f32 %v3150_v9, %v1420_v12 }
 0x1c1   : > { %v1700_v19 = vadd.f32 %v1684_v14, %v1652_v11  ;;  %v2401_v21 = vpop.f32.mrb[4].mxu1  ;;  %v3234_v11 = vld [vmem:[%s3604_s9 + $0x40] sm:$0xff] }
 0x1c2   : > { %v1698_v23 = vadd.f32 %v1682_v17, %v1650_v15  ;;  %v1137_v28 = vadd.f32 %v2401_v21, %v3093_v48  ;;  %v2441_v24 = vpop.f32.mrb[4].mxu0  ;;  %v1128_v27 = vpop.f32.mrb[5].mxu1 }
 0x1c3   : > { %v3174_v30 = vpack.c.bf16 %v1700_v19, %v1699_v13  ;;  %v1441_v31 = vadd.f32 %v2441_v24, %v3100_v49  ;;  %v1129_v32 = vadd.f32 %v3093_v48, %v1128_v27  ;;  %v1432_v33 = vpop.f32.mrb[5].mxu0  ;;  %v2402_v35 = vpop.f32.mrb[6].mxu1  ;;  %v3248_v19 = vld [vmem:[%s3604_s9 + $0x58] sm:$0xff] }
 0x1c4   : > { %v1769_v37 = vpack.c.bf16 %v1698_v23, %v1697_v16  ;;  %v1655_v38 = vmul.f32 %v3161_v22, %v1137_v28  ;;  %v1433_v39 = vadd.f32 %v3100_v49, %v1432_v33  ;;  %v1140_v40 = vadd.f32 %v2402_v35, %v3093_v48  ;;  %v2442_v41 = vpop.f32.mrb[6].mxu0  ;;  %v1131_v43 = vpop.f32.mrb[7].mxu1  ;;  %v3243_v16 = vld [vmem:[%s3605_s17 + $0x40] sm:$0xff]  ;;  %v3261_v33 = vld [vmem:[%s3604_s9 + $0x48] sm:$0xff] }
 0x1c5   : > { %v1687_v18 = vmul.f32 %v3167_v26, %v1441_v31  ;;  %v1653_v45 = vmul.f32 %v3172_v29, %v1129_v32  ;;  %v1444_v46 = vadd.f32 %v2442_v41, %v3100_v49  ;;  %v1132_v47 = vadd.f32 %v3093_v48, %v1131_v43  ;;  %v1435_v50 = vpop.f32.mrb[7].mxu0  ;;  %v3256_v31 = vld [vmem:[%s3605_s17 + $0x58] sm:$0xff]  ;;  %v3270_v41 = vld [vmem:[%s3605_s17 + $0x48] sm:$0xff] }
 0x1c6   : > { %v1685_v53 = vmul.f32 %v3181_v34, %v1433_v39  ;;  %v1656_v55 = vmul.f32 %v3186_v36, %v1140_v40  ;;  %v1436_v57 = vadd.f32 %v3100_v49, %v1435_v50  ;;  %2503 = vmatprep.subr.msk.bf16.mxu0 %vm1777_vm1, %v1769_v37  ;;  %v1803_v58 = vsel %vm1777_vm1, %v1769_v37, 0 }
 0x1c7   : > { %v1703_v59 = vadd.f32 %v1687_v18, %v1655_v38  ;;  %v1688_v61 = vmul.f32 %v3194_v42, %v1444_v46  ;;  %v1654_v63 = vmul.f32 %v3199_v44, %v1132_v47  ;;  %2472 = vmatpush3.bf16.xpose.msra.mxu0 %v1803_v58  ;;  %v1806_v46 = vsel %vm1777_vm1, %v3174_v30, 0 }
 0x1c8   : > { %v1701_v0 = vadd.f32 %v1685_v53, %v1653_v45  ;;  %v1686_v1 = vmul.f32 %v3208_v52, %v1436_v57  ;;  %2504 = vmatprep.subr.msk.bf16.mxu0 %vm1777_vm1, %v3174_v30 }
 0x1c9   : > { %v1704_v2 = vadd.f32 %v1688_v61, %v1656_v55  ;;  %v2405_v4 = vpop.f32.mrb[8].mxu1  ;;  %v3284_v61 = vld [vmem:[%s3604_s9 + $0x70] sm:$0xff] }
 0x1ca   : > { %v1702_v7 = vadd.f32 %v1686_v1, %v1654_v63  ;;  %v1153_v20 = vadd.f32 %v2405_v4, %v3093_v48  ;;  %v2445_v25 = vpop.f32.mrb[8].mxu0  ;;  %v1144_v10 = vpop.f32.mrb[9].mxu1  ;;  %v3290_v1 = vld [vmem:[%s3605_s17 + $0x70] sm:$0xff]  ;;  %v3295_v4 = vld [vmem:[%s3604_s9 + $0x60] sm:$0xff] }
 0x1cb   : > { %v3236_v12 = vpack.c.bf16 %v1704_v2, %v1703_v59  ;;  %v1457_v13 = vadd.f32 %v2445_v25, %v3100_v49  ;;  %v1145_v14 = vadd.f32 %v3093_v48, %v1144_v10  ;;  %v1448_v15 = vpop.f32.mrb[9].mxu0  ;;  %v2406_v17 = vpop.f32.mrb[10].mxu1 }
 0x1cc   : > { %v1771_v21 = vpack.c.bf16 %v1702_v7, %v1701_v0  ;;  %v1659_v23 = vmul.f32 %v3223_v6, %v1153_v20  ;;  %v1449_v28 = vadd.f32 %v3100_v49, %v1448_v15  ;;  %v1156_v24 = vadd.f32 %v2406_v17, %v3093_v48  ;;  %v2446_v27 = vpop.f32.mrb[10].mxu0  ;;  %v1147_v32 = vpop.f32.mrb[11].mxu1  ;;  %v3307_v15 = vld [vmem:[%s3604_s9 + $0x78] sm:$0xff] }
 0x1cd   : > { %v1691_v35 = vmul.f32 %v3229_v8, %v1457_v13  ;;  %v1657_v37 = vmul.f32 %v3234_v11, %v1145_v14  ;;  %v1460_v38 = vadd.f32 %v2446_v27, %v3100_v49  ;;  %v1148_v39 = vadd.f32 %v3093_v48, %v1147_v32  ;;  %v1451_v40 = vpop.f32.mrb[11].mxu0  ;;  %v3302_v13 = vld [vmem:[%s3605_s17 + $0x60] sm:$0xff]  ;;  %v3315_v32 = vld [vmem:[%s3605_s17 + $0x78] sm:$0xff] }
 0x1ce   : > { %v1689_v43 = vmul.f32 %v3243_v16, %v1449_v28  ;;  %v1660_v18 = vmul.f32 %v3248_v19, %v1156_v24  ;;  %v1452_v45 = vadd.f32 %v3100_v49, %v1451_v40 }
 0x1cf   : > { %v1707_v47 = vadd.f32 %v1691_v35, %v1659_v23  ;;  %v1692_v50 = vmul.f32 %v3256_v31, %v1460_v38  ;;  %v1658_v53 = vmul.f32 %v3261_v33, %v1148_v39  ;;  %2474 = vmatpush3.bf16.xpose.msra.mxu0 %v1806_v46 }
 0x1d0   : > { %v1705_v55 = vadd.f32 %v1689_v43, %v1657_v37  ;;  %v1690_v57 = vmul.f32 %v3270_v41, %v1452_v45  ;;  %2505 = vmatprep.subr.msk.bf16.mxu0 %vm1777_vm1, %v1771_v21  ;;  %v3320_v37 = vld [vmem:[%s3604_s9 + $0x68] sm:$0xff] }
 0x1d1   : > { %v1708_v58 = vadd.f32 %v1692_v50, %v1660_v18  ;;  %v2409_v59 = vpop.f32.mrb[12].mxu1  ;;  %v3329_v45 = vld [vmem:[%s3605_s17 + $0x68] sm:$0xff] }
 0x1d2   : > { %v1706_v63 = vadd.f32 %v1690_v57, %v1658_v53  ;;  %v1169_v30 = vadd.f32 %v2409_v59, %v3093_v48  ;;  %v2449_v0 = vpop.f32.mrb[12].mxu0  ;;  %v1160_v2 = vpop.f32.mrb[13].mxu1  ;;  %3606 = vst [vmem:[#allocation21_spill] sm:$0xff] %v3329_v45  ;;  %v1809_v53 = vsel %vm1777_vm1, %v1771_v21, 0 }
 0x1d3   : > { %v1774_v7 = vpack.c.bf16 %v1708_v58, %v1707_v47  ;;  %v1473_v20 = vadd.f32 %v2449_v0, %v3100_v49  ;;  %v1161_v25 = vadd.f32 %v3093_v48, %v1160_v2  ;;  %v1464_v10 = vpop.f32.mrb[13].mxu0  ;;  %v2410_v14 = vpop.f32.mrb[14].mxu1 }
 0x1d4   : > { %v1773_v17 = vpack.c.bf16 %v1706_v63, %v1705_v55  ;;  %v1663_v23 = vmul.f32 %v3284_v61, %v1169_v30  ;;  %v1465_v28 = vadd.f32 %v3100_v49, %v1464_v10  ;;  %v1172_v24 = vadd.f32 %v2410_v14, %v3093_v48  ;;  %v2450_v27 = vpop.f32.mrb[14].mxu0  ;;  %v1163_v35 = vpop.f32.mrb[15].mxu1 }
 0x1d5   : > { %v1695_v38 = vmul.f32 %v3290_v1, %v1473_v20  ;;  %v1661_v39 = vmul.f32 %v3295_v4, %v1161_v25  ;;  %v1476_v40 = vadd.f32 %v2450_v27, %v3100_v49  ;;  %v1164_v43 = vadd.f32 %v3093_v48, %v1163_v35  ;;  %v1467_v18 = vpop.f32.mrb[15].mxu0 }
 0x1d6   : > { %v1693_v46 = vmul.f32 %v3302_v13, %v1465_v28  ;;  %v1664_v47 = vmul.f32 %v3307_v15, %v1172_v24  ;;  %v1468_v50 = vadd.f32 %v3100_v49, %v1467_v18  ;;  %v1812_v10 = vsel %vm1777_vm1, %v3236_v12, 0 }
 0x1d7   : > { %v1711_v55 = vadd.f32 %v1695_v38, %v1663_v23  ;;  %v1696_v57 = vmul.f32 %v3315_v32, %v1476_v40  ;;  %v1662_v58 = vmul.f32 %v3320_v37, %v1164_v43  ;;  %2476 = vmatpush3.bf16.xpose.msra.mxu0 %v1809_v53  ;;  %v1815_v27 = vsel %vm1777_vm1, %v1773_v17, 0 }
 0x1d8   : > { %v1709_v48 = vadd.f32 %v1693_v46, %v1661_v39  ;;  %v1694_v59 = vmul.f32 %v3329_v45, %v1468_v50  ;;  %2506 = vmatprep.subr.msk.bf16.mxu0 %vm1777_vm1, %v3236_v12  ;;  %v1818_v40 = vsel %vm1777_vm1, %v1774_v7, 0 }
 0x1d9   : > { %v1712_v63 = vadd.f32 %v1696_v57, %v1664_v47  ;;  %v2417_v30 = vpop.f32.mrb[16].mxu1  ;;  %v3368_v47 = vld [vmem:[%s3607_s30] ss:$0 sm:$0xff] }
 0x1da   : > { %v1710_v0 = vadd.f32 %v1694_v59, %v1662_v58  ;;  %v1296_v2 = vpop.f32.mrb[17].mxu1  ;;  %v1305_v53 = vadd.f32 %v2417_v30, %v3368_v47 }
 0x1db   : > { %v1776_v20 = vpack.c.bf16 %v1712_v63, %v1711_v55  ;;  %v2418_v49 = vpop.f32.mrb[18].mxu1  ;;  %v1297_v55 = vadd.f32 %v3368_v47, %v1296_v2 }
 0x1dc   : > { %v1775_v25 = vpack.c.bf16 %v1710_v0, %v1709_v48  ;;  %v1299_v21 = vpop.f32.mrb[19].mxu1  ;;  %v1308_v58 = vadd.f32 %v2418_v49, %v3368_v47 }
 0x1dd   : > { %v1300_v63 = vadd.f32 %v3368_v47, %v1299_v21  ;;  %v1713_v2 = vmul.f32 %v3116_v56, %v1297_v55 }
 0x1de   : > { %v1821_v50 = vsel %vm1777_vm1, %v1775_v25, 0 }
 0x1df   : > { %2478 = vmatpush3.bf16.xpose.msra.mxu0 %v1812_v10  ;;  %v1715_v10 = vmul.f32 %v3105_v51, %v1305_v53  ;;  %v1714_v51 = vmul.f32 %v3141_v5, %v1300_v63 }
 0x1e0   : > { %2507 = vmatprep.subr.msk.bf16.mxu0 %vm1777_vm1, %v1773_v17 }
 0x1e1   : > { %v2421_v14 = vpop.f32.mrb[20].mxu1 }
 0x1e2   : > { %v1312_v23 = vpop.f32.mrb[21].mxu1 }
 0x1e3   : > { %v2422_v28 = vpop.f32.mrb[22].mxu1 }
 0x1e4   : > { %v1315_v24 = vpop.f32.mrb[23].mxu1 }
 0x1e7   : > { %2480 = vmatpush3.bf16.xpose.msra.mxu0 %v1815_v27 }
 0x1e8   : > { %2508 = vmatprep.subr.msk.bf16.mxu0 %vm1777_vm1, %v1774_v7  ;;  %v3376_v7 = vld [vmem:[%s628_s13] ss:$0 sm:$0xff]  ;;  %s2324_s13 = sshll.u32 %s2690_s28, 4  ;;  %s2021_s28 = sshll.u32 %s2918_s27, 4  ;;  %s3476_s28 = int_to_ptr.vmem [resolvable:$true] %s2021_s28 }
 0x1e9   : > { %v3345_v35 = vpop.f32.mrb[24].mxu1  ;;  %s2018_s24 = sadd.s32 %s2325_s22, %s2324_s13  ;;  %s2612_s16 = scalar_lea.vmem %s3476_s28, 2048 }
 0x1ea   : > { %v3347_v38 = vpop.f32.mrb[25].mxu1  ;;  %s2326_s15 = sshll.u32 %s2018_s24, 7  ;;  %p2613_p1 = scmp.ne.s32.totalorder %s3476_s28, %s2612_s16 }
 0x1eb   : > { %v3349_v39 = vpop.f32.mrb[26].mxu1  ;;  %s3482_s19 = scalar_lea.hbm %s3612_s21, %s2326_s15  ;;  %p2619_p5 = scmp.lt.s32.totalorder %s3476_s28, %s2617_s2 }
 0x1ec   : > { %v3351_v12 = vpop.f32.mrb[27].mxu1  ;;  %p2614_p2 = pnand %p2613_p1, %p2834_p3  ;;  %p2620_p6 = scmp.lt.s32.totalorder %s2618_s25, %s2612_s16 }
 0x1ee   : > { %p2615_p4 = pneg %p2614_p2  ;;  %p2621_p7 = por %p2620_p6, %p2619_p5 }
 0x1ef   : > { %2482 = vmatpush3.bf16.xpose.msra.mxu0 %v1818_v40 }
 0x1f0   : > { %2509 = vmatprep.subr.msk.bf16.mxu0 %vm1777_vm1, %v1775_v25  ;;  %p2622_p9 = pnand %p2621_p7, %p2615_p4 }
 0x1f1   : > { %v3355_v43 = vpop.f32.mrb[28].mxu1 }
 0x1f2   : > { %v3357_v17 = vpop.f32.mrb[29].mxu1 }
 0x1f3   : > { %v3359_v18 = vpop.f32.mrb[30].mxu1 }
 0x1f4   : > { %v3361_v46 = vpop.f32.mrb[31].mxu1 }
 0x1f7   : > { %2484 = vmatpush3.bf16.xpose.msra.mxu0 %v1821_v50 }
 0x1f8   : > { %2510 = vmatprep.subr.msk.bf16.mxu0 %vm1777_vm1, %v1776_v20 }
 0x1f9   : > { %v2457_v57 = vpop.f32.mrb[32].mxu1 }
 0x1fa   : > { %v1545_v48 = vadd.f32 %v2457_v57, %v3376_v7  ;;  %v1536_v59 = vpop.f32.mrb[33].mxu1  ;;  %v1716_v57 = vmul.f32 %v3128_v62, %v1308_v58  ;;  %v1324_v62 = vadd.f32 %v2422_v28, %v3368_v47 }
 0x1fb   : > { %v1537_v0 = vadd.f32 %v3376_v7, %v1536_v59  ;;  %v2458_v25 = vpop.f32.mrb[34].mxu1  ;;  %v1824_v59 = vsel %vm1777_vm1, %v1776_v20, 0  ;;  %v1316_v20 = vadd.f32 %v3368_v47, %v1315_v24 }
 0x1fc   : > { %v1731_v27 = vmul.f32 %v3111_v54, %v1545_v48  ;;  %v1548_v30 = vadd.f32 %v2458_v25, %v3376_v7  ;;  %v1539_v40 = vpop.f32.mrb[35].mxu1  ;;  %v1321_v48 = vadd.f32 %v2421_v14, %v3368_v47  ;;  %v1720_v24 = vmul.f32 %v3186_v36, %v1324_v62 }
 0x1fd   : > { %v1729_v50 = vmul.f32 %v3123_v60, %v1537_v0  ;;  %v1540_v49 = vadd.f32 %v3376_v7, %v1539_v40  ;;  %v1313_v60 = vadd.f32 %v3368_v47, %v1312_v23  ;;  %v1340_v36 = vadd.f32 %v3349_v39, %v3368_v47 }
 0x1fe   : > { %v1747_v45 = vadd.f32 %v1731_v27, %v1715_v10  ;;  %v1732_v21 = vmul.f32 %v3136_v3, %v1548_v30  ;;  %v1719_v10 = vmul.f32 %v3161_v22, %v1321_v48  ;;  %v1718_v22 = vmul.f32 %v3199_v44, %v1316_v20 }
 0x1ff   : > { %v1745_v53 = vadd.f32 %v1729_v50, %v1713_v2  ;;  %v1730_v54 = vmul.f32 %v3150_v9, %v1540_v49  ;;  %2486 = vmatpush3.bf16.xpose.msra.mxu0 %v1824_v59  ;;  %v1717_v30 = vmul.f32 %v3172_v29, %v1313_v60  ;;  %v1337_v29 = vadd.f32 %v3345_v35, %v3368_v47 }
 0x200   : > { %v1748_v56 = vadd.f32 %v1732_v21, %v1716_v57  ;;  %v1329_v49 = vadd.f32 %v3368_v47, %v3347_v38  ;;  %v1332_v44 = vadd.f32 %v3368_v47, %v3351_v12  ;;  %v1724_v12 = vmul.f32 %v3248_v19, %v1340_v36 }
 0x201   : > { %v1746_v55 = vadd.f32 %v1730_v54, %v1714_v51  ;;  %v2461_v0 = vpop.f32.mrb[36].mxu1  ;;  %v1723_v54 = vmul.f32 %v3223_v6, %v1337_v29  ;;  %v1356_v19 = vadd.f32 %v3359_v18, %v3368_v47  ;;  %v1955_v29 = vld [vmem:[#allocation3] sm:$0xff] }
 0x202   : > { %v1762_v58 = vpack.c.bf16 %v1748_v56, %v1747_v45  ;;  %v1561_v3 = vadd.f32 %v2461_v0, %v3376_v7  ;;  %v1552_v25 = vpop.f32.mrb[37].mxu1  ;;  %v1721_v39 = vmul.f32 %v3234_v11, %v1329_v49  ;;  %v1722_v6 = vmul.f32 %v3261_v33, %v1332_v44 }
 0x203   : > { %v1761_v5 = vpack.c.bf16 %v1746_v55, %v1745_v53  ;;  %v1553_v63 = vadd.f32 %v3376_v7, %v1552_v25  ;;  %v2462_v9 = vpop.f32.mrb[38].mxu1  ;;  %v1353_v11 = vadd.f32 %v3355_v43, %v3368_v47  ;;  %v1348_v33 = vadd.f32 %v3368_v47, %v3361_v46 }
 0x204   : > { %v1735_v14 = vmul.f32 %v3167_v26, %v1561_v3  ;;  %v1564_v23 = vadd.f32 %v2462_v9, %v3376_v7  ;;  %v1555_v27 = vpop.f32.mrb[39].mxu1  ;;  %v1345_v3 = vadd.f32 %v3368_v47, %v3357_v17  ;;  %v1728_v46 = vmul.f32 %v3307_v15, %v1356_v19  ;;  %v1923_v15 = vld [vmem:[#allocation2] sm:$0xff] }
 0x205   : > { %v1733_v45 = vmul.f32 %v3181_v34, %v1553_v63  ;;  %v1556_v28 = vadd.f32 %v3376_v7, %v1555_v27  ;;  %2487 = vmatprep.mubr.msk.bf16.mxu0 %vm1777_vm1, %v1761_v5 }
 0x206   : > { %v1751_v40 = vadd.f32 %v1735_v14, %v1719_v10  ;;  %v1736_v2 = vmul.f32 %v3194_v42, %v1564_v23  ;;  %2488 = vmatmul.mubr.msk.bf16.vlgmr.msra.gmra.mrb[16].mxu0 %vm1777_vm1, %v1762_v58  ;;  %v1727_v10 = vmul.f32 %v3284_v61, %v1353_v11  ;;  %v1725_v18 = vmul.f32 %v3295_v4, %v1345_v3  ;;  %v1960_v3 = vld [vmem:[#allocation3 + $0x28] sm:$0xff] }
 0x207   : > { %v1749_v26 = vadd.f32 %v1733_v45, %v1717_v30  ;;  %v1734_v50 = vmul.f32 %v3208_v52, %v1556_v28  ;;  %v1726_v61 = vmul.f32 %v3320_v37, %v1348_v33  ;;  %v3608_v28 = vld [vmem:[#allocation21_spill] sm:$0xff] }
 0x208   : > { %v1752_v34 = vadd.f32 %v1736_v2, %v1720_v24 }
 0x209   : > { %v1750_v57 = vadd.f32 %v1734_v50, %v1718_v22  ;;  %v2465_v21 = vpop.f32.mrb[40].mxu1 }
 0x20a   : > { %v1764_v42 = vpack.c.bf16 %v1752_v34, %v1751_v40  ;;  %v1577_v59 = vadd.f32 %v2465_v21, %v3376_v7  ;;  %v1568_v51 = vpop.f32.mrb[41].mxu1  ;;  %v1924_v34 = vld [vmem:[#allocation2 + $0x8] sm:$0xff]  ;;  %v1958_v21 = vld [vmem:[#allocation3 + $0x18] sm:$0xff] }
 0x20b   : > { %v1763_v52 = vpack.c.bf16 %v1750_v57, %v1749_v26  ;;  %v1569_v53 = vadd.f32 %v3376_v7, %v1568_v51  ;;  %v2466_v35 = vpop.f32.mrb[42].mxu1  ;;  %v1926_v26 = vld [vmem:[#allocation2 + $0x18] sm:$0xff]  ;;  %v1956_v51 = vld [vmem:[#allocation3 + $0x8] sm:$0xff] }
 0x20c   : > { %v1739_v38 = vmul.f32 %v3229_v8, %v1577_v59  ;;  %v1580_v48 = vadd.f32 %v2466_v35, %v3376_v7  ;;  %v1571_v56 = vpop.f32.mrb[43].mxu1 }
 0x20d   : > { %v1737_v60 = vmul.f32 %v3243_v16, %v1569_v53  ;;  %v1572_v55 = vadd.f32 %v3376_v7, %v1571_v56  ;;  %2491 = vmatprep.mubr.msk.bf16.mxu0 %vm1777_vm1, %v1763_v52  ;;  %v1961_v56 = vld [vmem:[#allocation3 + $0x30] sm:$0xff] }
 0x20e   : > { %v1755_v0 = vadd.f32 %v1739_v38, %v1723_v54  ;;  %v1740_v62 = vmul.f32 %v3256_v31, %v1580_v48  ;;  %2492 = vmatmul.mubr.msk.bf16.gmra.mrb[20].mxu0 %vm1777_vm1, %v1764_v42  ;;  %v1929_v54 = vld [vmem:[#allocation2 + $0x30] sm:$0xff]  ;;  %v1927_v38 = vld [vmem:[#allocation2 + $0x20] sm:$0xff] }
 0x20f   : > { %v1753_v8 = vadd.f32 %v1737_v60, %v1721_v39  ;;  %v1738_v58 = vmul.f32 %v3270_v41, %v1572_v55  ;;  %v1930_v39 = vld [vmem:[#allocation2 + $0x38] sm:$0xff] }
 0x210   : > { %v1756_v16 = vadd.f32 %v1740_v62, %v1724_v12  ;;  %v1959_v12 = vld [vmem:[#allocation3 + $0x20] sm:$0xff] }
 0x211   : > { %v1754_v25 = vadd.f32 %v1738_v58, %v1722_v6  ;;  %v2469_v20 = vpop.f32.mrb[44].mxu1 }
 0x212   : > { %v1766_v31 = vpack.c.bf16 %v1756_v16, %v1755_v0  ;;  %v1593_v5 = vadd.f32 %v2469_v20, %v3376_v7  ;;  %v1584_v63 = vpop.f32.mrb[45].mxu1  ;;  %v1928_v0 = vld [vmem:[#allocation2 + $0x28] sm:$0xff] }
 0x213   : > { %v1765_v41 = vpack.c.bf16 %v1754_v25, %v1753_v8  ;;  %v1585_v9 = vadd.f32 %v3376_v7, %v1584_v63  ;;  %v2470_v43 = vpop.f32.mrb[46].mxu1  ;;  %v1962_v8 = vld [vmem:[#allocation3 + $0x38] sm:$0xff]  ;;  %v1931_v63 = vld [vmem:[#allocation2 + $0x40] sm:$0xff] }
 0x214   : > { %v1743_v17 = vmul.f32 %v3290_v1, %v1593_v5  ;;  %v1596_v14 = vadd.f32 %v2470_v43, %v3376_v7  ;;  %v1587_v23 = vpop.f32.mrb[47].mxu1  ;;  %v1933_v5 = vld [vmem:[#allocation2 + $0x50] sm:$0xff] }
 0x215   : > { %v1741_v27 = vmul.f32 %v3302_v13, %v1585_v9  ;;  %v1588_v30 = vadd.f32 %v3376_v7, %v1587_v23  ;;  %2495 = vmatprep.mubr.msk.bf16.mxu0 %vm1777_vm1, %v1765_v41  ;;  %v1925_v7 = vld [vmem:[#allocation2 + $0x10] sm:$0xff]  ;;  %v1934_v9 = vld [vmem:[#allocation2 + $0x58] sm:$0xff] }
 0x216   : > { %v1759_v47 = vadd.f32 %v1743_v17, %v1727_v10  ;;  %v1744_v45 = vmul.f32 %v3315_v32, %v1596_v14  ;;  %2496 = vmatmul.mubr.msk.bf16.gmra.mrb[24].mxu0 %vm1777_vm1, %v1766_v31  ;;  %v1957_v32 = vld [vmem:[#allocation3 + $0x10] sm:$0xff]  ;;  %v1963_v17 = vld [vmem:[#allocation3 + $0x40] sm:$0xff]  ;;  %v1932_v14 = vld [vmem:[#allocation2 + $0x48] sm:$0xff] }
 0x217   : > { %v1757_v1 = vadd.f32 %v1741_v27, %v1725_v18  ;;  %v1742_v24 = vmul.f32 %v3608_v28, %v1588_v30  ;;  %v1965_v41 = vld [vmem:[#allocation3 + $0x50] sm:$0xff]  ;;  %v1966_v27 = vld [vmem:[#allocation3 + $0x58] sm:$0xff] }
 0x218   : > { %v1760_v40 = vadd.f32 %v1744_v45, %v1728_v46  ;;  %v1964_v45 = vld [vmem:[#allocation3 + $0x48] sm:$0xff] }
 0x219   : > { %v1758_v4 = vadd.f32 %v1742_v24, %v1726_v61 }
 0x21a   : > { %v1768_v2 = vpack.c.bf16 %v1760_v40, %v1759_v47  ;;  %v1937_v40 = vld [vmem:[#allocation2 + $0x70] sm:$0xff] }
 0x21b   : > { %v1767_v13 = vpack.c.bf16 %v1758_v4, %v1757_v1  ;;  %v1935_v4 = vld [vmem:[#allocation2 + $0x60] sm:$0xff] }
 0x21d   : > { %2499 = vmatprep.mubr.msk.bf16.mxu0 %vm1777_vm1, %v1767_v13  ;;  %v1969_v13 = vld [vmem:[#allocation3 + $0x70] sm:$0xff] }
 0x21e   : > { %2500 = vmatmul.mubr.msk.bf16.gmra.mrb[28].mxu0 %vm1777_vm1, %v1768_v2 }
 0x2d9   : > { %v2489_v22 = vpop.f32.mrb[16].mxu0 }
 0x2da   : > { %v1941_v50 = vmul.f32 %v2489_v22, %v1925_v7  ;;  %v1860_v37 = vpop.f32.mrb[17].mxu0  ;;  %v1938_v7 = vld [vmem:[#allocation2 + $0x78] sm:$0xff] }
 0x2db   : > { %v1939_v49 = vmul.f32 %v1923_v15, %v1860_v37  ;;  %v2490_v57 = vpop.f32.mrb[18].mxu0 }
 0x2dc   : > { %v1973_v36 = vadd.f32 %v1957_v32, %v1941_v50  ;;  %v1942_v42 = vmul.f32 %v2490_v57, %v1926_v26  ;;  %v1863_v59 = vpop.f32.mrb[19].mxu0  ;;  %v1967_v32 = vld [vmem:[#allocation3 + $0x60] sm:$0xff]  ;;  %v1936_v26 = vld [vmem:[#allocation2 + $0x68] sm:$0xff] }
 0x2dd   : > { %v1971_v44 = vadd.f32 %v1955_v29, %v1939_v49  ;;  %v1940_v52 = vmul.f32 %v1924_v34, %v1863_v59  ;;  %v1970_v29 = vld [vmem:[#allocation3 + $0x78] sm:$0xff] }
 0x2de   : > { %1989 = vst [vmem:[%s2918_s27 + $0x10] sm:$0xff] %v1973_v36  ;;  %v1974_v53 = vadd.f32 %v1958_v21, %v1942_v42  ;;  %v1968_v21 = vld [vmem:[#allocation3 + $0x68] sm:$0xff] }
 0x2df   : > { %1987 = vst [vmem:[%s2918_s27] sm:$0xff] %v1971_v44  ;;  %v1972_v35 = vadd.f32 %v1956_v51, %v1940_v52 }
 0x2e0   : > { %1990 = vst [vmem:[%s2918_s27 + $0x18] sm:$0xff] %v1974_v53 }
 0x2e1   : > { %1988 = vst [vmem:[%s2918_s27 + $0x8] sm:$0xff] %v1972_v35  ;;  %v2493_v48 = vpop.f32.mrb[20].mxu0 }
 0x2e2   : > { %v1945_v60 = vmul.f32 %v2493_v48, %v1929_v54  ;;  %v1876_v55 = vpop.f32.mrb[21].mxu0 }
 0x2e3   : > { %v1943_v62 = vmul.f32 %v1927_v38, %v1876_v55  ;;  %v2494_v6 = vpop.f32.mrb[22].mxu0 }
 0x2e4   : > { %v1977_v58 = vadd.f32 %v1961_v56, %v1945_v60  ;;  %v1946_v11 = vmul.f32 %v2494_v6, %v1930_v39  ;;  %v1879_v16 = vpop.f32.mrb[23].mxu0 }
 0x2e5   : > { %v1975_v25 = vadd.f32 %v1959_v12, %v1943_v62  ;;  %v1944_v20 = vmul.f32 %v1928_v0, %v1879_v16 }
 0x2e6   : > { %1993 = vst [vmem:[%s2918_s27 + $0x30] sm:$0xff] %v1977_v58  ;;  %v1978_v19 = vadd.f32 %v1962_v8, %v1946_v11 }
 0x2e7   : > { %1991 = vst [vmem:[%s2918_s27 + $0x20] sm:$0xff] %v1975_v25  ;;  %v1976_v31 = vadd.f32 %v1960_v3, %v1944_v20 }
 0x2e8   : > { %1994 = vst [vmem:[%s2918_s27 + $0x38] sm:$0xff] %v1978_v19 }
 0x2e9   : > { %1992 = vst [vmem:[%s2918_s27 + $0x28] sm:$0xff] %v1976_v31  ;;  %v2497_v33 = vpop.f32.mrb[24].mxu0 }
 0x2ea   : > { %v1949_v43 = vmul.f32 %v2497_v33, %v1933_v5  ;;  %v1892_v10 = vpop.f32.mrb[25].mxu0 }
 0x2eb   : > { %v1947_v23 = vmul.f32 %v1931_v63, %v1892_v10  ;;  %v2498_v18 = vpop.f32.mrb[26].mxu0 }
 0x2ec   : > { %v1981_v30 = vadd.f32 %v1965_v41, %v1949_v43  ;;  %v1950_v46 = vmul.f32 %v2498_v18, %v1934_v9  ;;  %v1895_v47 = vpop.f32.mrb[27].mxu0 }
 0x2ed   : > { %v1979_v61 = vadd.f32 %v1963_v17, %v1947_v23  ;;  %v1948_v1 = vmul.f32 %v1932_v14, %v1895_v47 }
 0x2ee   : > { %1997 = vst [vmem:[%s2918_s27 + $0x50] sm:$0xff] %v1981_v30  ;;  %v1982_v28 = vadd.f32 %v1966_v27, %v1950_v46 }
 0x2ef   : > { %1995 = vst [vmem:[%s2918_s27 + $0x40] sm:$0xff] %v1979_v61  ;;  %v1980_v24 = vadd.f32 %v1964_v45, %v1948_v1 }
 0x2f0   : > { %1998 = vst [vmem:[%s2918_s27 + $0x58] sm:$0xff] %v1982_v28 }
 0x2f1   : > { %1996 = vst [vmem:[%s2918_s27 + $0x48] sm:$0xff] %v1980_v24  ;;  %v2501_v2 = vpop.f32.mrb[28].mxu0 }
 0x2f2   : > { %v1953_v15 = vmul.f32 %v2501_v2, %v1937_v40  ;;  %v1908_v22 = vpop.f32.mrb[29].mxu0 }
 0x2f3   : > { %v1951_v50 = vmul.f32 %v1935_v4, %v1908_v22  ;;  %v2502_v37 = vpop.f32.mrb[30].mxu0 }
 0x2f4   : > { %v1985_v34 = vadd.f32 %v1969_v13, %v1953_v15  ;;  %v1954_v49 = vmul.f32 %v2502_v37, %v1938_v7  ;;  %v1911_v57 = vpop.f32.mrb[31].mxu0 }
 0x2f5   : > { %v1983_v36 = vadd.f32 %v1967_v32, %v1951_v50  ;;  %v1952_v42 = vmul.f32 %v1936_v26, %v1911_v57 }
 0x2f6   : > { %2001 = vst [vmem:[%s2918_s27 + $0x70] sm:$0xff] %v1985_v34  ;;  %v1986_v59 = vadd.f32 %v1970_v29, %v1954_v49 }
 0x2f7   : > { %1999 = vst [vmem:[%s2918_s27 + $0x60] sm:$0xff] %v1983_v36  ;;  %v1984_v51 = vadd.f32 %v1968_v21, %v1952_v42 }
 0x2f8   : > { %2002 = vst [vmem:[%s2918_s27 + $0x78] sm:$0xff] %v1986_v59 }
 0x2f9   : > { %2000 = vst [vmem:[%s2918_s27 + $0x68] sm:$0xff] %v1984_v51 }
 0x2fa   : > { %2625 = shalt.err (!%p2622_p9)
}
 0x2fb   : > { %s2626_s27 = scalar_lea.hbm %s3482_s19, 2048  ;;  %s2630_s14 = scalar_lea.hbm %s3612_s21, 8192 }
 0x2fc   : > { %p2627_p10 = scmp.ne.s32.totalorder %s3482_s19, %s2626_s27  ;;  %p2631_p13 = scmp.lt.u32.totalorder %s3482_s19, %s3612_s21 }
 0x2fd   : > { %p2632_p0 = scmp.lt.u32.totalorder %s2630_s14, %s2626_s27  ;;  %p2634_p2 = scmp.lt.u32.totalorder %s2626_s27, %s3482_s19 }
 0x2fe   : > { %p2628_p11 = pnand %p2627_p10, %p2834_p3 }
 0x2ff   : > { %p2633_p1 = por %p2632_p0, %p2631_p13 }
 0x300   : > { %p2629_p12 = pneg %p2628_p11 }
 0x301   : > { %p2635_p4 = por %p2634_p2, %p2633_p1 }
 0x303   : > { %p2636_p5 = pnand %p2635_p4, %p2629_p12 }
 0x305   : > { %2639 = shalt.err (!%p2636_p5)
}
 0x306   : > { %s2711_s22 = smov 128   ;;  %s2712_s24 = smov 8  }
 0x307   : > { %2511 = dma.vmem_to_hbm [thread:$0]  (%p2834_p3), %s3476_s28, 2048, %s3482_s19, %s3488_s0, %s2711_s22, %s2711_s22, %s2712_s24  }
 0x308 PF: > { %s3614_s23 = sld [smem:[#allocation13_spill]]  ;;  %s3615_s15 = sld [smem:[#allocation7_spill]] }
 0x30e   : > { %p2517_p6 = scmp.ge.s32.totalorder %s3614_s23, 2  ;;  %s2036_s29 = sand.u32 1, %s3615_s15  }
 0x30f   : > { %s2037_s3 = scalar_lea.sflag [#allocation5], %s2036_s29 }
 0x310   : > { %p2514_p7 = pnand %p2517_p6, %p2843_p8 }
 0x312   : > { %2673 = dma.done.wait (!%p2514_p7), %s2037_s3, 2048  }
 0x313   : > { %2675 = vsyncadd (!%p2514_p7), %s2037_s3, 4294965248  ;;  %s26_s15 = sadd.s32 1, %s3614_s23   ;;  %s3617_s25 = sld [smem:[#allocation8_spill]] }
 0x314   : > { %p23_p9 = scmp.ge.s32.totalorder %s26_s15, 6   ;;  %s3618_s26 = sld [smem:[#allocation9_spill]] }
 0x315   : > { %s3619_s27 = sld [smem:[#allocation18_spill]]  ;;  %s3620_s28 = sld [smem:[#allocation11_spill]] }
 0x316   : > { %s3621_s29 = sld [smem:[#allocation12_spill]]  ;;  %s3622_s30 = sld [smem:[#allocation14_spill]] }
 0x317   : > { %s3623_s14 = sld [smem:[#allocation16_spill]]  ;;  %25 = sbr.rel (!%p23_p9) target bundleno = 13 (0xd), region = 144 }
 0x31e   :  { %2042 = vsyncpa [#allocation5], 1 }
 0x31f   :  { %2044 = vsyncpa [#allocation5 + $0x1], 1 }

</bundles_post_ra>
